<compile_context>
chip_gen: v7x
topology: tpu7x:2x2x1
jax: 0.10.0
libtpu: 0.0.40
codegen_flags: <defaults>
</compile_context>

<pallas_src>
import functools

import jax
import jax.numpy as jnp
from jax import lax
from jax.experimental import pallas as pl
from jax.experimental.pallas import tpu as pltpu


DIM_HIDDEN = 128      # module default dim_hidden=128
LAYERS = 4            # module default layers=4
OUT_DIM = 2
OUT_PAD_ROWS = 8      # head rows padded to one sublane group
TILE_B = 8192         # batch rows per grid step
CHUNK_B = 512         # rows per inner sub-chunk (lane dim of the matmuls)


def _softplus(z):
    # torch.nn.Softplus(beta=1, threshold=20): log(1 + exp(z)), linear above 20.
    return jnp.where(z > 20.0, z, jnp.log1p(jnp.exp(jnp.minimum(z, 20.0))))


def _make_kernel(num_layers, chunks_per_tile, chunk_b, dim_hidden, out_pad_rows):
    """Kernel over refs: (x, w0, b0, w1, b1, ..., w_out, b_out, o).

    Weights are stored torch-style (out_features, in_features); activations are
    kept transposed as (features, chunk) so batch is the lane axis.
    """

    def kernel(x_ref, *rest):
        o_ref = rest[-1]
        p = rest[:-1]

        # Parameter loads (hidden / head weights arrive pre-cast to bf16).
        w0 = p[0][...]                                        # (H, 1)  f32
        b0 = p[1][...]                                        # (H, 1)  f32
        w_hid = [p[2 * li][...] for li in range(1, num_layers)]      # (H, H) bf16
        b_hid = [p[2 * li + 1][...] for li in range(1, num_layers)]  # (H, 1) f32
        wo = p[2 * num_layers][...]                           # (8, H)  bf16
        bo = p[2 * num_layers + 1][...]                       # (8, 1)  f32

        # Hoist all broadcasts out of the chunk loop (no CSE of broadcast_in_dim).
        w0b = jnp.broadcast_to(w0, (dim_hidden, chunk_b))
        b0b = jnp.broadcast_to(b0, (dim_hidden, chunk_b))
        bhb = [jnp.broadcast_to(b, (dim_hidden, chunk_b)) for b in b_hid]
        bob = jnp.broadcast_to(bo, (out_pad_rows, chunk_b))

        def body(c, carry):
            xc = x_ref[c]                                     # (1, chunk) f32
            # First layer is a K=1 rank-1 op: VPU broadcast multiply, no MXU.
            h = jnp.tanh(w0b * xc + b0b).astype(jnp.bfloat16)  # (H, chunk)
            # Hidden layers: bf16 MXU matmul, f32 accumulate / tanh, back to bf16.
            for li in range(num_layers - 1):
                z = jnp.dot(w_hid[li], h,
                            preferred_element_type=jnp.float32) + bhb[li]
                h = jnp.tanh(z).astype(jnp.bfloat16)
            # Head: (8, H) @ (H, chunk); rows 2..7 are zero-padding.
            z = jnp.dot(wo, h, preferred_element_type=jnp.float32) + bob
            o_ref[c] = _softplus(z[:OUT_DIM, :])              # (2, chunk) lane-dense
            return carry

        lax.fori_loop(0, chunks_per_tile, body, 0, unroll=True)

    return kernel


@functools.partial(jax.jit, static_argnames=("tile_b", "chunk_b"))
def _forward_padded(x3, params, *, tile_b, chunk_b):
    """x3: (n_chunks_total, 1, chunk_b) f32.  Returns (n_chunks_total, 2, chunk_b)."""
    num_layers = len(params) // 2 - 1
    dim_hidden = params[0].shape[0]
    n_chunks_total = x3.shape[0]
    chunks_per_tile = tile_b // chunk_b
    grid = (n_chunks_total // chunks_per_tile,)

    # Pre-cast hidden/head weights to bf16 once; pad the head to 8 output rows
    # (sublane alignment).  Biases stay f32.
    w_out, b_out = params[-2], params[-1]
    w_out_p = (jnp.zeros((OUT_PAD_ROWS, dim_hidden), w_out.dtype)
               .at[:OUT_DIM, :].set(w_out).astype(jnp.bfloat16))
    b_out_p = jnp.zeros((OUT_PAD_ROWS, 1), b_out.dtype).at[:OUT_DIM, :].set(b_out)
    kparams = [params[0], params[1]]
    for li in range(1, num_layers):
        kparams.append(params[2 * li].astype(jnp.bfloat16))
        kparams.append(params[2 * li + 1])
    kparams += [w_out_p, b_out_p]
    kparams = tuple(kparams)

    x_spec = pl.BlockSpec((chunks_per_tile, 1, chunk_b), lambda i: (i, 0, 0))
    # Params: full arrays, resident across all grid steps (constant index_map).
    # Default-arg capture avoids the late-binding lambda bug.
    param_specs = [
        pl.BlockSpec(p.shape, lambda i, nd=p.ndim: (0,) * nd) for p in kparams
    ]
    out_spec = pl.BlockSpec((chunks_per_tile, OUT_DIM, chunk_b), lambda i: (i, 0, 0))

    return pl.pallas_call(
        _make_kernel(num_layers, chunks_per_tile, chunk_b, dim_hidden, OUT_PAD_ROWS),
        out_shape=jax.ShapeDtypeStruct((n_chunks_total, OUT_DIM, chunk_b), jnp.float32),
        grid_spec=pltpu.PrefetchScalarGridSpec(
            num_scalar_prefetch=0,
            grid=grid,
            in_specs=[x_spec] + param_specs,
            out_specs=out_spec,
        ),
        compiler_params=pltpu.CompilerParams(
            dimension_semantics=("parallel",),
            vmem_limit_bytes=32 * 1024 * 1024,
        ),
    )(x3, *kparams)


def nn_forward_pallas(x, params, *, tile_b=TILE_B, chunk_b=CHUNK_B):
    """x: (N, 1) float32; params: flat tuple (w0, b0, ..., w_out, b_out),
    weights torch-layout (out_features, in_features), biases (out_features, 1)."""
    assert tile_b % chunk_b == 0
    n = x.shape[0]
    # Per-step tile: keep >= 2 grid steps (v7x megacore) when the batch allows it.
    if n >= 2 * tile_b:
        tb = tile_b
    else:
        half = -(-n // 2)                                     # ceil(n / 2)
        tb = min(-(-max(half, chunk_b) // chunk_b) * chunk_b, tile_b)
    n_pad = -(-n // tb) * tb

    xf = jnp.reshape(x, (-1,))
    if n_pad != n:
        xf = jnp.pad(xf, (0, n_pad - n))
    x3 = xf.reshape(n_pad // chunk_b, 1, chunk_b)             # chunks on leading axis

    out3 = _forward_padded(x3, params, tile_b=tb, chunk_b=chunk_b)
    out = out3.transpose(0, 2, 1).reshape(n_pad, OUT_DIM)     # back to (N, 2)
    return out[:n]


def init_params(key, dim_hidden=DIM_HIDDEN, layers=LAYERS, out_dim=OUT_DIM):
    """Deterministic init mirroring torch Linear shapes: W (out, in), b (out, 1)."""
    # TODO(synk): torch.manual_seed(123) RNG stream cannot be reproduced in JAX;
    # the same uniform(-1/sqrt(fan_in), 1/sqrt(fan_in)) scheme is used instead.
    dims = [1] + [dim_hidden] * layers + [out_dim]
    params = []
    for i in range(len(dims) - 1):
        fan_in, fan_out = dims[i], dims[i + 1]
        key, kw, kb = jax.random.split(key, 3)
        bound = 1.0 / (fan_in ** 0.5)
        w = jax.random.uniform(kw, (fan_out, fan_in), jnp.float32, -bound, bound)
        b = jax.random.uniform(kb, (fan_out, 1), jnp.float32, -bound, bound)
        params += [w, b]
    return tuple(params)


def nn_forward_ref(x, params, matmul_dtype=jnp.float32):
    """Pure-JAX reference. matmul_dtype=bf16 mimics the kernel's mixed precision."""
    n_pairs = len(params) // 2
    # First layer stays f32 in the kernel too (VPU broadcast path).
    h = jnp.tanh(x * params[0].T + params[1].T)
    for i in range(1, n_pairs - 1):
        w, b = params[2 * i], params[2 * i + 1]
        z = jnp.dot(h.astype(matmul_dtype), w.T.astype(matmul_dtype),
                    preferred_element_type=jnp.float32) + b.T
        h = jnp.tanh(z)
    w, b = params[-2], params[-1]
    z = jnp.dot(h.astype(matmul_dtype), w.T.astype(matmul_dtype),
                preferred_element_type=jnp.float32) + b.T
    return _softplus(z)


if __name__ == "__main__":
    key = jax.random.PRNGKey(0)
    key, kx = jax.random.split(key)

    batch = 1000   # not a tile multiple: exercises padding; gives a 2-step grid
    x = jax.random.normal(kx, (batch, 1), jnp.float32)
    params = init_params(key)

    out = jax.block_until_ready(nn_forward_pallas(x, params))
    assert out.shape == (batch, OUT_DIM)

    # Tight check against a reference matching the kernel's bf16 matmul path.
    ref_mixed = nn_forward_ref(x, params, matmul_dtype=jnp.bfloat16)
    assert jnp.allclose(out, ref_mixed, atol=1e-2, rtol=1e-2), (
        "mismatch vs bf16-matched reference, max_abs_err="
        f"{float(jnp.max(jnp.abs(out - ref_mixed)))}")

    # Looser sanity check against the full-f32 reference.
    ref_f32 = nn_forward_ref(x, params, matmul_dtype=jnp.float32)
    assert jnp.allclose(out, ref_f32, atol=5e-2, rtol=5e-2), (
        "mismatch vs f32 reference, max_abs_err="
        f"{float(jnp.max(jnp.abs(out - ref_f32)))}")

    # Exercise the multi-chunk-per-step path (chunks_per_tile > 1).
    out2 = jax.block_until_ready(
        nn_forward_pallas(x, params, tile_b=1024, chunk_b=256))
    assert out2.shape == (batch, OUT_DIM)
    assert jnp.allclose(out2, ref_mixed, atol=1e-2, rtol=1e-2), (
        "multi-chunk path mismatch, max_abs_err="
        f"{float(jnp.max(jnp.abs(out2 - ref_mixed)))}")

    print("KERNEL_OK")
</pallas_src>

<mosaic_0001>
module attributes {stable_mosaic.version = 11 : i64} {
  func.func @kernel(%arg0: i32, %arg1: memref<1x1x512xf32, #tpu.memory_space<vmem>>, %arg2: memref<128x1xf32, #tpu.memory_space<vmem>>, %arg3: memref<128x1xf32, #tpu.memory_space<vmem>>, %arg4: memref<128x128xbf16, #tpu.memory_space<vmem>>, %arg5: memref<128x1xf32, #tpu.memory_space<vmem>>, %arg6: memref<128x128xbf16, #tpu.memory_space<vmem>>, %arg7: memref<128x1xf32, #tpu.memory_space<vmem>>, %arg8: memref<128x128xbf16, #tpu.memory_space<vmem>>, %arg9: memref<128x1xf32, #tpu.memory_space<vmem>>, %arg10: memref<8x128xbf16, #tpu.memory_space<vmem>>, %arg11: memref<8x1xf32, #tpu.memory_space<vmem>>, %arg12: memref<1x2x512xf32, #tpu.memory_space<vmem>>) attributes {dimension_semantics = [#tpu.dimension_semantics<parallel>], iteration_bounds = array<i64: 2>, scalar_prefetch = 0 : i64, scratch_operands = 0 : i64, tpu.core_type = #tpu.core_type<tc>, window_params = [{transform_indices = @transform_0, window_bounds = array<i64: 1, 1, 512>}, {pipeline_mode = #tpu.pipeline_mode<synchronous>, transform_indices = @transform_1, window_bounds = array<i64: 128, 1>}, {pipeline_mode = #tpu.pipeline_mode<synchronous>, transform_indices = @transform_2, window_bounds = array<i64: 128, 1>}, {pipeline_mode = #tpu.pipeline_mode<synchronous>, transform_indices = @transform_3, window_bounds = array<i64: 128, 128>}, {pipeline_mode = #tpu.pipeline_mode<synchronous>, transform_indices = @transform_4, window_bounds = array<i64: 128, 1>}, {pipeline_mode = #tpu.pipeline_mode<synchronous>, transform_indices = @transform_5, window_bounds = array<i64: 128, 128>}, {pipeline_mode = #tpu.pipeline_mode<synchronous>, transform_indices = @transform_6, window_bounds = array<i64: 128, 1>}, {pipeline_mode = #tpu.pipeline_mode<synchronous>, transform_indices = @transform_7, window_bounds = array<i64: 128, 128>}, {pipeline_mode = #tpu.pipeline_mode<synchronous>, transform_indices = @transform_8, window_bounds = array<i64: 128, 1>}, {pipeline_mode = #tpu.pipeline_mode<synchronous>, transform_indices = @transform_9, window_bounds = array<i64: 8, 128>}, {pipeline_mode = #tpu.pipeline_mode<synchronous>, transform_indices = @transform_10, window_bounds = array<i64: 8, 1>}, {transform_indices = @transform_11, window_bounds = array<i64: 1, 2, 512>}]} {
    %c0 = arith.constant 0 : index
    %c0_0 = arith.constant 0 : index
    %0 = vector.load %arg2[%c0, %c0_0] : memref<128x1xf32, #tpu.memory_space<vmem>>, vector<128x1xf32>
    %c0_1 = arith.constant 0 : index
    %c0_2 = arith.constant 0 : index
    %1 = vector.load %arg3[%c0_1, %c0_2] : memref<128x1xf32, #tpu.memory_space<vmem>>, vector<128x1xf32>
    %c0_3 = arith.constant 0 : index
    %c0_4 = arith.constant 0 : index
    %2 = vector.load %arg4[%c0_3, %c0_4] : memref<128x128xbf16, #tpu.memory_space<vmem>>, vector<128x128xbf16>
    %c0_5 = arith.constant 0 : index
    %c0_6 = arith.constant 0 : index
    %3 = vector.load %arg6[%c0_5, %c0_6] : memref<128x128xbf16, #tpu.memory_space<vmem>>, vector<128x128xbf16>
    %c0_7 = arith.constant 0 : index
    %c0_8 = arith.constant 0 : index
    %4 = vector.load %arg8[%c0_7, %c0_8] : memref<128x128xbf16, #tpu.memory_space<vmem>>, vector<128x128xbf16>
    %c0_9 = arith.constant 0 : index
    %c0_10 = arith.constant 0 : index
    %5 = vector.load %arg5[%c0_9, %c0_10] : memref<128x1xf32, #tpu.memory_space<vmem>>, vector<128x1xf32>
    %c0_11 = arith.constant 0 : index
    %c0_12 = arith.constant 0 : index
    %6 = vector.load %arg7[%c0_11, %c0_12] : memref<128x1xf32, #tpu.memory_space<vmem>>, vector<128x1xf32>
    %c0_13 = arith.constant 0 : index
    %c0_14 = arith.constant 0 : index
    %7 = vector.load %arg9[%c0_13, %c0_14] : memref<128x1xf32, #tpu.memory_space<vmem>>, vector<128x1xf32>
    %c0_15 = arith.constant 0 : index
    %c0_16 = arith.constant 0 : index
    %8 = vector.load %arg10[%c0_15, %c0_16] : memref<8x128xbf16, #tpu.memory_space<vmem>>, vector<8x128xbf16>
    %c0_17 = arith.constant 0 : index
    %c0_18 = arith.constant 0 : index
    %9 = vector.load %arg11[%c0_17, %c0_18] : memref<8x1xf32, #tpu.memory_space<vmem>>, vector<8x1xf32>
    %10 = vector.shape_cast %0 : vector<128x1xf32> to vector<128x1xf32>
    %11 = vector.broadcast %10 : vector<128x1xf32> to vector<128x512xf32>
    %12 = vector.shape_cast %1 : vector<128x1xf32> to vector<128x1xf32>
    %13 = vector.broadcast %12 : vector<128x1xf32> to vector<128x512xf32>
    %14 = vector.shape_cast %5 : vector<128x1xf32> to vector<128x1xf32>
    %15 = vector.broadcast %14 : vector<128x1xf32> to vector<128x512xf32>
    %16 = vector.shape_cast %6 : vector<128x1xf32> to vector<128x1xf32>
    %17 = vector.broadcast %16 : vector<128x1xf32> to vector<128x512xf32>
    %18 = vector.shape_cast %7 : vector<128x1xf32> to vector<128x1xf32>
    %19 = vector.broadcast %18 : vector<128x1xf32> to vector<128x512xf32>
    %20 = vector.shape_cast %9 : vector<8x1xf32> to vector<8x1xf32>
    %21 = vector.broadcast %20 : vector<8x1xf32> to vector<8x512xf32>
    %c0_i32 = arith.constant 0 : i32
    %22 = arith.index_cast %c0_i32 : i32 to index
    %c0_19 = arith.constant 0 : index
    %c0_20 = arith.constant 0 : index
    %23 = vector.load %arg1[%22, %c0_19, %c0_20] : memref<1x1x512xf32, #tpu.memory_space<vmem>>, vector<1x1x512xf32>
    %24 = vector.shape_cast %23 : vector<1x1x512xf32> to vector<1x512xf32>
    %25 = vector.broadcast %24 : vector<1x512xf32> to vector<128x512xf32>
    %26 = arith.mulf %11, %25 : vector<128x512xf32>
    %27 = arith.addf %26, %13 : vector<128x512xf32>
    %28 = math.tanh %27 : vector<128x512xf32>
    %29 = arith.truncf %28 : vector<128x512xf32> to vector<128x512xbf16>
    %cst = arith.constant dense<0.000000e+00> : vector<128x512xf32>
    %30 = tpu.matmul %2, %29, %cst {dimension_numbers = #tpu.dot_dimension_numbers<[1], [0], [0], [1], [0, 0, 1, 1], [], []>} : vector<128x128xbf16>, vector<128x512xbf16>, vector<128x512xf32> -> vector<128x512xf32>
    %31 = arith.addf %30, %15 : vector<128x512xf32>
    %32 = math.tanh %31 : vector<128x512xf32>
    %33 = arith.truncf %32 : vector<128x512xf32> to vector<128x512xbf16>
    %cst_21 = arith.constant dense<0.000000e+00> : vector<128x512xf32>
    %34 = tpu.matmul %3, %33, %cst_21 {dimension_numbers = #tpu.dot_dimension_numbers<[1], [0], [0], [1], [0, 0, 1, 1], [], []>} : vector<128x128xbf16>, vector<128x512xbf16>, vector<128x512xf32> -> vector<128x512xf32>
    %35 = arith.addf %34, %17 : vector<128x512xf32>
    %36 = math.tanh %35 : vector<128x512xf32>
    %37 = arith.truncf %36 : vector<128x512xf32> to vector<128x512xbf16>
    %cst_22 = arith.constant dense<0.000000e+00> : vector<128x512xf32>
    %38 = tpu.matmul %4, %37, %cst_22 {dimension_numbers = #tpu.dot_dimension_numbers<[1], [0], [0], [1], [0, 0, 1, 1], [], []>} : vector<128x128xbf16>, vector<128x512xbf16>, vector<128x512xf32> -> vector<128x512xf32>
    %39 = arith.addf %38, %19 : vector<128x512xf32>
    %40 = math.tanh %39 : vector<128x512xf32>
    %41 = arith.truncf %40 : vector<128x512xf32> to vector<128x512xbf16>
    %cst_23 = arith.constant dense<0.000000e+00> : vector<8x512xf32>
    %42 = tpu.matmul %8, %41, %cst_23 {dimension_numbers = #tpu.dot_dimension_numbers<[1], [0], [0], [1], [0, 0, 1, 1], [], []>} : vector<8x128xbf16>, vector<128x512xbf16>, vector<8x512xf32> -> vector<8x512xf32>
    %43 = arith.addf %42, %21 : vector<8x512xf32>
    %44 = vector.extract_strided_slice %43 {offsets = [0, 0], sizes = [2, 512], strides = [1, 1]} : vector<8x512xf32> to vector<2x512xf32>
    %cst_24 = arith.constant 2.000000e+01 : f32
    %45 = vector.broadcast %cst_24 : f32 to vector<2x512xf32>
    %46 = arith.cmpf ogt, %44, %45 : vector<2x512xf32>
    %cst_25 = arith.constant 2.000000e+01 : f32
    %47 = vector.broadcast %cst_25 : f32 to vector<2x512xf32>
    %48 = arith.minimumf %44, %47 : vector<2x512xf32>
    %49 = math.exp %48 : vector<2x512xf32>
    %50 = math.log1p %49 : vector<2x512xf32>
    %51 = arith.select %46, %44, %50 : vector<2x512xi1>, vector<2x512xf32>
    %52 = arith.index_cast %c0_i32 : i32 to index
    %c0_26 = arith.constant 0 : index
    %c0_27 = arith.constant 0 : index
    %53 = vector.load %arg12[%52, %c0_26, %c0_27] : memref<1x2x512xf32, #tpu.memory_space<vmem>>, vector<1x2x512xf32>
    %54 = vector.shape_cast %53 : vector<1x2x512xf32> to vector<2x512xf32>
    %55 = vector.shape_cast %51 : vector<2x512xf32> to vector<1x2x512xf32>
    tpu.vector_store %arg12[%52, %c0_26, %c0_27], %55 {strides = array<i32>} : memref<1x2x512xf32, #tpu.memory_space<vmem>>, vector<1x2x512xf32>,
    %c1_i32 = arith.constant 1 : i32
    return
  }
  func.func @transform_0(%arg0: i32) -> (i32, i32, i32) {
    %c0_i32 = arith.constant 0 : i32
    %c0_i32_0 = arith.constant 0 : i32
    %c0_i32_1 = arith.constant 0 : i32
    return %arg0, %c0_i32, %c0_i32_0 : i32, i32, i32
  }
  func.func @transform_1(%arg0: i32) -> (i32, i32) {
    %c0_i32 = arith.constant 0 : i32
    %c0_i32_0 = arith.constant 0 : i32
    %c0_i32_1 = arith.constant 0 : i32
    return %c0_i32, %c0_i32_0 : i32, i32
  }
  func.func @transform_2(%arg0: i32) -> (i32, i32) {
    %c0_i32 = arith.constant 0 : i32
    %c0_i32_0 = arith.constant 0 : i32
    %c0_i32_1 = arith.constant 0 : i32
    return %c0_i32, %c0_i32_0 : i32, i32
  }
  func.func @transform_3(%arg0: i32) -> (i32, i32) {
    %c0_i32 = arith.constant 0 : i32
    %c0_i32_0 = arith.constant 0 : i32
    %c0_i32_1 = arith.constant 0 : i32
    return %c0_i32, %c0_i32_0 : i32, i32
  }
  func.func @transform_4(%arg0: i32) -> (i32, i32) {
    %c0_i32 = arith.constant 0 : i32
    %c0_i32_0 = arith.constant 0 : i32
    %c0_i32_1 = arith.constant 0 : i32
    return %c0_i32, %c0_i32_0 : i32, i32
  }
  func.func @transform_5(%arg0: i32) -> (i32, i32) {
    %c0_i32 = arith.constant 0 : i32
    %c0_i32_0 = arith.constant 0 : i32
    %c0_i32_1 = arith.constant 0 : i32
    return %c0_i32, %c0_i32_0 : i32, i32
  }
  func.func @transform_6(%arg0: i32) -> (i32, i32) {
    %c0_i32 = arith.constant 0 : i32
    %c0_i32_0 = arith.constant 0 : i32
    %c0_i32_1 = arith.constant 0 : i32
    return %c0_i32, %c0_i32_0 : i32, i32
  }
  func.func @transform_7(%arg0: i32) -> (i32, i32) {
    %c0_i32 = arith.constant 0 : i32
    %c0_i32_0 = arith.constant 0 : i32
    %c0_i32_1 = arith.constant 0 : i32
    return %c0_i32, %c0_i32_0 : i32, i32
  }
  func.func @transform_8(%arg0: i32) -> (i32, i32) {
    %c0_i32 = arith.constant 0 : i32
    %c0_i32_0 = arith.constant 0 : i32
    %c0_i32_1 = arith.constant 0 : i32
    return %c0_i32, %c0_i32_0 : i32, i32
  }
  func.func @transform_9(%arg0: i32) -> (i32, i32) {
    %c0_i32 = arith.constant 0 : i32
    %c0_i32_0 = arith.constant 0 : i32
    %c0_i32_1 = arith.constant 0 : i32
    return %c0_i32, %c0_i32_0 : i32, i32
  }
  func.func @transform_10(%arg0: i32) -> (i32, i32) {
    %c0_i32 = arith.constant 0 : i32
    %c0_i32_0 = arith.constant 0 : i32
    %c0_i32_1 = arith.constant 0 : i32
    return %c0_i32, %c0_i32_0 : i32, i32
  }
  func.func @transform_11(%arg0: i32) -> (i32, i32, i32) {
    %c0_i32 = arith.constant 0 : i32
    %c0_i32_0 = arith.constant 0 : i32
    %c0_i32_1 = arith.constant 0 : i32
    return %arg0, %c0_i32, %c0_i32_0 : i32, i32, i32
  }
}

</mosaic_0001>

<bundles_post_ra>
// kernel: _forward_padded.1
= control target key start
LH: loop header
LB: loop body
LE: loop exit
PB: predicated region body
PF: predicated region fallthrough
CT: control target
= control target key end

     0   :  { %s3843_s0 = inlined_call_operand.vmem [shape: f32[2,1,512], index: 0, kind: input, shape index: {}]   ;;  %s3844_s1 = inlined_call_operand.vmem [shape: f32[128,1], index: 1, kind: input, shape index: {}]   ;;  %s3845_s2 = inlined_call_operand.vmem [shape: f32[128,1], index: 2, kind: input, shape index: {}]   ;;  %s3846_s3 = inlined_call_operand.vmem [shape: bf16[128,128], index: 3, kind: input, shape index: {}]   ;;  %s3847_s4 = inlined_call_operand.vmem [shape: f32[128,1], index: 4, kind: input, shape index: {}]   ;;  %s3848_s5 = inlined_call_operand.vmem [shape: bf16[128,128], index: 5, kind: input, shape index: {}]   ;;  %s3849_s6 = inlined_call_operand.vmem [shape: f32[128,1], index: 6, kind: input, shape index: {}]   ;;  %s3850_s7 = inlined_call_operand.vmem [shape: bf16[128,128], index: 7, kind: input, shape index: {}]   ;;  %s3851_s8 = inlined_call_operand.vmem [shape: f32[128,1], index: 8, kind: input, shape index: {}]   ;;  %s3852_s9 = inlined_call_operand.vmem [shape: bf16[8,128], index: 9, kind: input, shape index: {}]   ;;  %s3853_s10 = inlined_call_operand.vmem [shape: f32[8,1], index: 10, kind: input, shape index: {}]   ;;  %s3854_s11 = inlined_call_operand.hbm [shape: f32[2,2,512], index: 11, kind: output, shape index: {}]  }
   0x1   :  { %3855 = sst [smem:[#allocation5_spill]] %s3844_s1 }
   0x2   :  { %16 = vsyncpa [#allocation3], 0 }
   0x3   :  { %18 = vsyncpa [#allocation3 + $0x1], 0  ;;  %s3267_s17 = smov 0   ;;  %s3269_s18 = smov 0  }
   0x4   :  { %s3271_s19 = smov 0   ;;  %s3273_s20 = smov 0  }
   0x5 LB: > { %s3288_s21 = sadd.s32 4294967295, %s3202_s20   ;;  %s2509_s22 = sadd.s32 4294967294, %s3202_s20   ;;  %s3202_s20 = sphi %s3273_s20, %s3862_s20   ;;  %s3198_s19 = sphi %s3271_s19, %s3861_s19   ;;  %s3194_s18 = sphi %s3269_s18, %s3860_s18   ;;  %s3190_s17 = sphi %s3267_s17, %s3859_s17  }
   0x6   : > { %s3292_s23 = sadd.s32 1, %s3202_s20   ;;  %s267_s24 = sadd.s32 1, %s3198_s19 }
   0x7   : > { %s264_s25 = ssub.s32 %s3202_s20, %s3292_s23  ;;  %p277_p0 = scmp.ne.s32.totalorder %s3198_s19, %s3194_s18 }
   0x8   : > { %p265_p1 = scmp.eq.s32.totalorder %s264_s25, 0  ;;  %p278_p2 = scmp.eq.s32.totalorder %s3288_s21, 1 }
   0x9   : > { %p283_p3 = scmp.ne.s32.totalorder %s3194_s18, %s3190_s17  ;;  %p284_p4 = scmp.eq.s32.totalorder %s2509_s22, 1 }
   0xa   : > { %s3303_s26 = scalar_select %p265_p1, %s3198_s19, %s267_s24  }
   0xb   : > { %p3305_p5 = por %p278_p2, %p277_p0  ;;  %p3309_p6 = por %p284_p4, %p283_p3 }
   0xc   : > { %p2512_p7 = scmp.ge.s32.totalorder %s3202_s20, 1  ;;  %p339_p8 = scmp.lt.s32.totalorder %s3202_s20, 3 }
   0xe   : > { %p340_p9 = pnand %p2512_p7, %p339_p8 }
   0xf   : > { %v399_v0 = vld [vmem:[%s3845_s2] sm:$0xff] (!%p340_p9)  ;;  %s3858_s1 = sld [smem:[#allocation5_spill]] (!%p340_p9)  ;;  %v3204_v2 = vmov (!%p340_p9), 0   ;;  %v400_v3 = vld [vmem:[%s3845_s2 + $0x8] sm:$0xff] (!%p340_p9)  ;;  %v402_v7 = vld [vmem:[%s3845_s2 + $0x18] sm:$0xff] (!%p340_p9)  ;;  %p378_p10 = scmp.lt.s32.totalorder (!%p340_p9), %s3288_s21, 1  ;;  %v920_v59 = vlaneseq (!%p340_p9) }
  0x10   : > { %343 = sbr.rel (%p340_p9) target bundleno = 1395 (0x573), region = 64  ;;  %2587 = vset.pattern.permute.xlu1 (!%p340_p9), %v3204_v2  ;;  %2586 = vset.pattern.permute.xlu0 (!%p340_p9), %v3204_v2  ;;  %v401_v8 = vld [vmem:[%s3845_s2 + $0x10] sm:$0xff] (!%p340_p9)  ;;  %v404_v11 = vld [vmem:[%s3845_s2 + $0x28] sm:$0xff] (!%p340_p9)  ;;  %v403_v12 = vld [vmem:[%s3845_s2 + $0x20] sm:$0xff] (!%p340_p9)  ;;  %s2544_s29 = sshll.u32 (!%p340_p9), %s3288_s21, 7 }
  0x11   : > { %595 = vperm.xlu1 (!%p340_p9), %2587, %v399_v0   ;;  %1244 = vmatprep.mubr.bf16.mxu0 (!%p340_p9), %v3204_v2  ;;  %v406_v15 = vld [vmem:[%s3845_s2 + $0x38] sm:$0xff] (!%p340_p9)  ;;  %v405_v16 = vld [vmem:[%s3845_s2 + $0x30] sm:$0xff] (!%p340_p9)  ;;  %v408_v19 = vld [vmem:[%s3845_s2 + $0x48] sm:$0xff] (!%p340_p9)  ;;  %v3501_v62 = vshrl.u32 (!%p340_p9), %v920_v59, 7  ;;  %s3799_s14 = scalar_lea.hbm (!%p340_p9), %s3854_s11, %s2544_s29 }
  0x12   : > { %1357 = vmatprep.mubr.bf16.mxu1 (!%p340_p9), %v3204_v2  ;;  %v407_v20 = vld [vmem:[%s3845_s2 + $0x40] sm:$0xff] (!%p340_p9)  ;;  %v410_v23 = vld [vmem:[%s3845_s2 + $0x58] sm:$0xff] (!%p340_p9)  ;;  %v409_v24 = vld [vmem:[%s3845_s2 + $0x50] sm:$0xff] (!%p340_p9) }
  0x13   : > { %v412_v27 = vld [vmem:[%s3845_s2 + $0x68] sm:$0xff] (!%p340_p9)  ;;  %v411_v28 = vld [vmem:[%s3845_s2 + $0x60] sm:$0xff] (!%p340_p9)  ;;  %v414_v31 = vld [vmem:[%s3845_s2 + $0x78] sm:$0xff] (!%p340_p9) }
  0x14   : > { %v413_v32 = vld [vmem:[%s3845_s2 + $0x70] sm:$0xff] (!%p340_p9)  ;;  %v464_v33 = vld [vmem:[%s3847_s4 + $0x8] sm:$0xff] (!%p340_p9)  ;;  %v463_v34 = vld [vmem:[%s3847_s4] sm:$0xff] (!%p340_p9) }
  0x15   : > { %v383_v1 = vld [vmem:[%s3858_s1] sm:$0xff] (!%p340_p9)  ;;  %v384_v4 = vld [vmem:[%s3858_s1 + $0x8] sm:$0xff] (!%p340_p9)  ;;  %600 = vperm.xlu1 (!%p340_p9), %2587, %v400_v3   ;;  %v386_v5 = vld [vmem:[%s3858_s1 + $0x18] sm:$0xff] (!%p340_p9)  ;;  %v926_v3 = vsub.s32 (!%p340_p9), 1, %v3501_v62 }
  0x16   : > { %515 = vperm.xlu0 (!%p340_p9), %2586, %v383_v1   ;;  %v385_v6 = vld [vmem:[%s3858_s1 + $0x10] sm:$0xff] (!%p340_p9)  ;;  %v388_v9 = vld [vmem:[%s3858_s1 + $0x28] sm:$0xff] (!%p340_p9)  ;;  %v387_v10 = vld [vmem:[%s3858_s1 + $0x20] sm:$0xff] (!%p340_p9)  ;;  %v922_v1 = vsub.s32 (!%p340_p9), 0, %v3501_v62 }
  0x17   : > { %v390_v13 = vld [vmem:[%s3858_s1 + $0x38] sm:$0xff]  ;;  %v389_v14 = vld [vmem:[%s3858_s1 + $0x30] sm:$0xff]  ;;  %v392_v17 = vld [vmem:[%s3858_s1 + $0x48] sm:$0xff]  ;;  %s379_s16 = scalar_select %p378_p10, %s3288_s21, 1 }
  0x18   : > { %v391_v18 = vld [vmem:[%s3858_s1 + $0x40] sm:$0xff]  ;;  %v394_v21 = vld [vmem:[%s3858_s1 + $0x58] sm:$0xff]  ;;  %v393_v22 = vld [vmem:[%s3858_s1 + $0x50] sm:$0xff]  ;;  %s3206_s21 = smov [#allocation2]  }
  0x19   : > { %530 = vperm.xlu1 %2587, %v386_v5   ;;  %v396_v25 = vld [vmem:[%s3858_s1 + $0x68] sm:$0xff]  ;;  %v395_v26 = vld [vmem:[%s3858_s1 + $0x60] sm:$0xff]  ;;  %v398_v29 = vld [vmem:[%s3858_s1 + $0x78] sm:$0xff]  ;;  %s2514_s30 = sshll.u32 %s379_s16, 2  ;;  %v934_v5 = vsub.s32 3, %v3501_v62  ;;  %s375_s16 = sand.u32 1, %s3194_s18  }
  0x1a   : > { %520 = vperm.xlu0 %2586, %v384_v4   ;;  %v397_v30 = vld [vmem:[%s3858_s1 + $0x70] sm:$0xff]  ;;  %v466_v35 = vld [vmem:[%s3847_s4 + $0x18] sm:$0xff]  ;;  %v468_v37 = vld [vmem:[%s3847_s4 + $0x28] sm:$0xff]  ;;  %s381_s24 = scalar_lea.vmem %s3843_s0, %s2514_s30  ;;  %v930_v4 = vsub.s32 2, %v3501_v62  ;;  %s2513_s25 = sshll.u32 %s375_s16, 3 }
  0x1b   : > { %v465_v36 = vld [vmem:[%s3847_s4 + $0x10] sm:$0xff]  ;;  %v467_v38 = vld [vmem:[%s3847_s4 + $0x20] sm:$0xff]  ;;  %v470_v39 = vld [vmem:[%s3847_s4 + $0x38] sm:$0xff]  ;;  %s377_s12 = scalar_lea.vmem [#allocation2], %s2513_s25  ;;  %s2436_s15 = scalar_lea.sflag [#allocation3], %s375_s16 }
  0x1c   : > { %v469_v40 = vld [vmem:[%s3847_s4 + $0x30] sm:$0xff]  ;;  %v472_v41 = vld [vmem:[%s3847_s4 + $0x48] sm:$0xff]  ;;  %v471_v42 = vld [vmem:[%s3847_s4 + $0x40] sm:$0xff]  ;;  %s2450_s1 = sshll.u32 %s377_s12, 4  ;;  %s3801_s1 = int_to_ptr.vmem [resolvable:$true] %s2450_s1 }
  0x1d   : > { %610 = vperm.xlu1 %2587, %v402_v7   ;;  %v474_v43 = vld [vmem:[%s3847_s4 + $0x58] sm:$0xff]  ;;  %v473_v44 = vld [vmem:[%s3847_s4 + $0x50] sm:$0xff]  ;;  %v476_v45 = vld [vmem:[%s3847_s4 + $0x68] sm:$0xff]  ;;  %s3140_s22 = scalar_lea.vmem %s3801_s1, 128 }
  0x1e   : > { %525 = vperm.xlu0 %2586, %v385_v6   ;;  %v475_v46 = vld [vmem:[%s3847_s4 + $0x60] sm:$0xff]  ;;  %v478_v47 = vld [vmem:[%s3847_s4 + $0x78] sm:$0xff]  ;;  %v477_v48 = vld [vmem:[%s3847_s4 + $0x70] sm:$0xff]  ;;  %p3141_p11 = scmp.ne.s32.totalorder %s3801_s1, %s3140_s22 }
  0x1f   : > { %v480_v49 = vld [vmem:[%s3849_s6 + $0x8] sm:$0xff]  ;;  %v479_v50 = vld [vmem:[%s3849_s6] sm:$0xff]  ;;  %v482_v51 = vld [vmem:[%s3849_s6 + $0x18] sm:$0xff] }
  0x20   : > { %v481_v52 = vld [vmem:[%s3849_s6 + $0x10] sm:$0xff]  ;;  %v484_v53 = vld [vmem:[%s3849_s6 + $0x28] sm:$0xff]  ;;  %v483_v54 = vld [vmem:[%s3849_s6 + $0x20] sm:$0xff]  ;;  %p3142_p12 = pnand %p3141_p11, %p3305_p5 }
  0x21   : > { %540 = vperm.xlu1 %2587, %v388_v9   ;;  %v486_v55 = vld [vmem:[%s3849_s6 + $0x38] sm:$0xff]  ;;  %v485_v56 = vld [vmem:[%s3849_s6 + $0x30] sm:$0xff]  ;;  %v488_v57 = vld [vmem:[%s3849_s6 + $0x48] sm:$0xff] }
  0x22   : > { %605 = vperm.xlu0 %2586, %v401_v8   ;;  %v487_v58 = vld [vmem:[%s3849_s6 + $0x40] sm:$0xff]  ;;  %v490_v60 = vld [vmem:[%s3849_s6 + $0x58] sm:$0xff]  ;;  %v489_v61 = vld [vmem:[%s3849_s6 + $0x50] sm:$0xff]  ;;  %p3143_p13 = pneg %p3142_p12 }
  0x23   : > { %v492_v63 = vld [vmem:[%s3849_s6 + $0x68] sm:$0xff]  ;;  %v491_v0 = vld [vmem:[%s3849_s6 + $0x60] sm:$0xff]  ;;  %v494_v7 = vld [vmem:[%s3849_s6 + $0x78] sm:$0xff] }
  0x24   : > { %v918_v6 = vld [vmem:[%s381_s24] sm:$0xf]  ;;  %v493_v8 = vld [vmem:[%s3849_s6 + $0x70] sm:$0xff]  ;;  %s3144_s24 = sshll.u32 %s3206_s21, 4  ;;  %s3145_s24 = int_to_ptr.vmem [resolvable:$false] %s3144_s24 }
  0x25   : > { %620 = vperm.xlu1 %2587, %v404_v11   ;;  %v3522_v9 = vrot.slane %v918_v6, %v922_v1  ;;  %v3526_v11 = vrot.slane %v918_v6, %v930_v4  ;;  %v503_v59 = vld [vmem:[%s3851_s8 + $0x40] sm:$0xff]  ;;  %s3146_s25 = scalar_lea.vmem %s3145_s24, 256  ;;  %p3147_p0 = scmp.lt.s32.totalorder %s3801_s1, %s3145_s24 }
  0x26   : > { %535 = vperm.xlu0 %2586, %v387_v10   ;;  %v3524_v10 = vrot.slane %v918_v6, %v926_v3  ;;  %p3148_p1 = scmp.lt.s32.totalorder %s3146_s25, %s3140_s22 }
  0x28   : > { %p3149_p2 = por %p3148_p1, %p3147_p0 }
  0x29   : > { %550 = vperm.xlu1 %2587, %v390_v13   ;;  %v496_v13 = vld [vmem:[%s3851_s8 + $0x8] sm:$0xff] }
  0x2a   : > { %615 = vperm.xlu0 %2586, %v403_v12   ;;  %v3528_v12 = vrot.slane %v918_v6, %v934_v5  ;;  %p3150_p3 = pnand %p3149_p2, %p3143_p13 }
  0x2d   : > { %630 = vperm.xlu1 %2587, %v406_v15  }
  0x2e   : > { %545 = vperm.xlu0 %2586, %v389_v14   ;;  %v495_v14 = vld [vmem:[%s3851_s8] sm:$0xff] }
  0x31   : > { %560 = vperm.xlu1 %2587, %v392_v17  }
  0x32   : > { %625 = vperm.xlu0 %2586, %v405_v16  }
  0x35   : > { %640 = vperm.xlu1 %2587, %v408_v19  }
  0x36   : > { %555 = vperm.xlu0 %2586, %v391_v18  }
  0x39   : > { %570 = vperm.xlu1 %2587, %v394_v21   ;;  %v498_v21 = vld [vmem:[%s3851_s8 + $0x18] sm:$0xff] }
  0x3a   : > { %635 = vperm.xlu0 %2586, %v407_v20  }
  0x3d   : > { %650 = vperm.xlu1 %2587, %v410_v23  }
  0x3e   : > { %565 = vperm.xlu0 %2586, %v393_v22  }
  0x41   : > { %580 = vperm.xlu1 %2587, %v396_v25   ;;  %v497_v25 = vld [vmem:[%s3851_s8 + $0x10] sm:$0xff] }
  0x42   : > { %645 = vperm.xlu0 %2586, %v409_v24  }
  0x45   : > { %660 = vperm.xlu1 %2587, %v412_v27  }
  0x46   : > { %575 = vperm.xlu0 %2586, %v395_v26  }
  0x49   : > { %590 = vperm.xlu1 %2587, %v398_v29  }
  0x4a   : > { %655 = vperm.xlu0 %2586, %v411_v28  }
  0x4d   : > { %670 = vperm.xlu1 %2587, %v414_v31  }
  0x4e   : > { %585 = vperm.xlu0 %2586, %v397_v30  }
  0x51   : > { %680 = vperm.xlu1 %2587, %v464_v33   ;;  %v500_v33 = vld [vmem:[%s3851_s8 + $0x28] sm:$0xff] }
  0x52   : > { %665 = vperm.xlu0 %2586, %v413_v32  }
  0x55   : > { %690 = vperm.xlu1 %2587, %v466_v35  }
  0x56   : > { %675 = vperm.xlu0 %2586, %v463_v34  }
  0x59   : > { %700 = vperm.xlu1 %2587, %v468_v37   ;;  %v499_v37 = vld [vmem:[%s3851_s8 + $0x20] sm:$0xff] }
  0x5a   : > { %685 = vperm.xlu0 %2586, %v465_v36  }
  0x5d   : > { %710 = vperm.xlu1 %2587, %v470_v39  }
  0x5e   : > { %695 = vperm.xlu0 %2586, %v467_v38  }
  0x61   : > { %720 = vperm.xlu1 %2587, %v472_v41   ;;  %v502_v41 = vld [vmem:[%s3851_s8 + $0x38] sm:$0xff] }
  0x62   : > { %705 = vperm.xlu0 %2586, %v469_v40  }
  0x65   : > { %730 = vperm.xlu1 %2587, %v474_v43  }
  0x66   : > { %715 = vperm.xlu0 %2586, %v471_v42  }
  0x69   : > { %740 = vperm.xlu1 %2587, %v476_v45   ;;  %v501_v45 = vld [vmem:[%s3851_s8 + $0x30] sm:$0xff] }
  0x6a   : > { %725 = vperm.xlu0 %2586, %v473_v44  }
  0x6d   : > { %750 = vperm.xlu1 %2587, %v478_v47  }
  0x6e   : > { %735 = vperm.xlu0 %2586, %v475_v46  }
  0x71   : > { %760 = vperm.xlu1 %2587, %v480_v49  }
  0x72   : > { %745 = vperm.xlu0 %2586, %v477_v48  }
  0x75   : > { %770 = vperm.xlu1 %2587, %v482_v51  }
  0x76   : > { %755 = vperm.xlu0 %2586, %v479_v50  }
  0x79   : > { %780 = vperm.xlu1 %2587, %v484_v53  }
  0x7a   : > { %765 = vperm.xlu0 %2586, %v481_v52  }
  0x7d   : > { %790 = vperm.xlu1 %2587, %v486_v55   ;;  %v504_v55 = vld [vmem:[%s3851_s8 + $0x48] sm:$0xff] }
  0x7e   : > { %775 = vperm.xlu0 %2586, %v483_v54  }
  0x81   : > { %800 = vperm.xlu1 %2587, %v488_v57  }
  0x82   : > { %785 = vperm.xlu0 %2586, %v485_v56  }
  0x85   : > { %810 = vperm.xlu1 %2587, %v490_v60  }
  0x86   : > { %795 = vperm.xlu0 %2586, %v487_v58  }
  0x89   : > { %820 = vperm.xlu1 %2587, %v492_v63  }
  0x8a   : > { %805 = vperm.xlu0 %2586, %v489_v61  }
  0x8d   : > { %830 = vperm.xlu1 %2587, %v494_v7   ;;  %v506_v7 = vld [vmem:[%s3851_s8 + $0x58] sm:$0xff] }
  0x8e   : > { %815 = vperm.xlu0 %2586, %v491_v0  }
  0x90   : > { %v596_v15 = vpop.permute.xlu1 %595 }
  0x91   : > { %840 = vperm.xlu1 %2587, %v496_v13  }
  0x92   : > { %825 = vperm.xlu0 %2586, %v493_v8  }
  0x94   : > { %v601_v27 = vpop.permute.xlu1 %600 }
  0x95   : > { %v516_v16 = vpop.permute.xlu0 %515  ;;  %850 = vperm.xlu1 %2587, %v498_v21  }
  0x96   : > { %v940_v17 = vmul.f32 %v3522_v9, %v516_v16  ;;  %v941_v18 = vmul.f32 %v3524_v10, %v516_v16  ;;  %v942_v19 = vmul.f32 %v3526_v11, %v516_v16  ;;  %v943_v20 = vmul.f32 %v3528_v12, %v516_v16  ;;  %835 = vperm.xlu0 %2586, %v495_v14   ;;  %v505_v16 = vld [vmem:[%s3851_s8 + $0x50] sm:$0xff] }
  0x98   : > { %v1004_v22 = vadd.f32 %v940_v17, %v596_v15  ;;  %v1005_v23 = vadd.f32 %v941_v18, %v596_v15  ;;  %v1006_v24 = vadd.f32 %v942_v19, %v596_v15  ;;  %v1007_v26 = vadd.f32 %v943_v20, %v596_v15  ;;  %v531_v39 = vpop.permute.xlu1 %530 }
  0x99   : > { %v521_v28 = vpop.permute.xlu0 %520  ;;  %860 = vperm.xlu1 %2587, %v500_v33   ;;  %v952_v42 = vmul.f32 %v3522_v9, %v531_v39  ;;  %v953_v43 = vmul.f32 %v3524_v10, %v531_v39  ;;  %v954_v44 = vmul.f32 %v3526_v11, %v531_v39  ;;  %v955_v46 = vmul.f32 %v3528_v12, %v531_v39 }
  0x9a   : > { %2612 = vtanh.f32 %v1004_v22  ;;  %v944_v29 = vmul.f32 %v3522_v9, %v521_v28  ;;  %v945_v30 = vmul.f32 %v3524_v10, %v521_v28  ;;  %v946_v31 = vmul.f32 %v3526_v11, %v521_v28  ;;  %845 = vperm.xlu0 %2586, %v497_v25  }
  0x9b   : > { %2614 = vtanh.f32 %v1005_v23  ;;  %v947_v32 = vmul.f32 %v3528_v12, %v521_v28 }
  0x9c   : > { %2616 = vtanh.f32 %v1006_v24  ;;  %v1008_v34 = vadd.f32 %v944_v29, %v601_v27  ;;  %v1009_v35 = vadd.f32 %v945_v30, %v601_v27  ;;  %v1010_v36 = vadd.f32 %v946_v31, %v601_v27  ;;  %v611_v47 = vpop.permute.xlu1 %610  ;;  %v508_v31 = vld [vmem:[%s3851_s8 + $0x68] sm:$0xff] }
  0x9d   : > { %2618 = vtanh.f32 %v1007_v26  ;;  %v1011_v38 = vadd.f32 %v947_v32, %v601_v27  ;;  %v526_v40 = vpop.permute.xlu0 %525  ;;  %v1016_v50 = vadd.f32 %v952_v42, %v611_v47  ;;  %v1017_v51 = vadd.f32 %v953_v43, %v611_v47  ;;  %870 = vperm.xlu1 %2587, %v502_v41  }
  0x9e   : > { %2620 = vtanh.f32 %v1008_v34  ;;  %855 = vperm.xlu0 %2586, %v499_v37   ;;  %v948_v49 = vmul.f32 %v3522_v9, %v526_v40  ;;  %v1018_v52 = vadd.f32 %v954_v44, %v611_v47  ;;  %v949_v53 = vmul.f32 %v3524_v10, %v526_v40 }
  0x9f   : > { %2622 = vtanh.f32 %v1009_v35  ;;  %v1019_v54 = vadd.f32 %v955_v46, %v611_v47  ;;  %v950_v57 = vmul.f32 %v3526_v11, %v526_v40  ;;  %v951_v61 = vmul.f32 %v3528_v12, %v526_v40  ;;  %v507_v40 = vld [vmem:[%s3851_s8 + $0x60] sm:$0xff] }
  0xa0   : > { %2624 = vtanh.f32 %v1010_v36  ;;  %v541_v0 = vpop.permute.xlu1 %540 }
  0xa1   : > { %2626 = vtanh.f32 %v1011_v38  ;;  %v606_v48 = vpop.permute.xlu0 %605  ;;  %880 = vperm.xlu1 %2587, %v504_v55   ;;  %v960_v13 = vmul.f32 %v3522_v9, %v541_v0  ;;  %v961_v14 = vmul.f32 %v3524_v10, %v541_v0  ;;  %v962_v15 = vmul.f32 %v3526_v11, %v541_v0  ;;  %v509_v55 = vld [vmem:[%s3851_s8 + $0x70] sm:$0xff] }
  0xa2   : > { %865 = vperm.xlu0 %2586, %v501_v45   ;;  %2628 = vtanh.f32 %v1016_v50  ;;  %v1012_v58 = vadd.f32 %v948_v49, %v606_v48  ;;  %v1013_v63 = vadd.f32 %v949_v53, %v606_v48  ;;  %v1014_v4 = vadd.f32 %v950_v57, %v606_v48  ;;  %v510_v45 = vld [vmem:[%s3851_s8 + $0x78] sm:$0xff] }
  0xa3   : > { %2630 = vtanh.f32 %v1017_v51  ;;  %v1015_v6 = vadd.f32 %v951_v61, %v606_v48  ;;  %v963_v18 = vmul.f32 %v3528_v12, %v541_v0 }
  0xa4   : > { %v3571_v56 = vpop.eup %2612  ;;  %2632 = vtanh.f32 %v1018_v52  ;;  %v621_v21 = vpop.permute.xlu1 %620 }
  0xa5   : > { %v2615_v60 = vpop.eup %2614  ;;  %v536_v1 = vpop.permute.xlu0 %535  ;;  %2634 = vtanh.f32 %v1019_v54  ;;  %v1024_v24 = vadd.f32 %v960_v13, %v621_v21  ;;  %v1025_v25 = vadd.f32 %v961_v14, %v621_v21  ;;  %v1026_v26 = vadd.f32 %v962_v15, %v621_v21  ;;  %890 = vperm.xlu1 %2587, %v506_v7  }
  0xa6   : > { %v2617_v3 = vpop.eup %2616  ;;  %875 = vperm.xlu0 %2586, %v503_v59   ;;  %2636 = vtanh.f32 %v1012_v58  ;;  %v956_v19 = vmul.f32 %v3522_v9, %v536_v1  ;;  %v957_v20 = vmul.f32 %v3524_v10, %v536_v1  ;;  %v958_v28 = vmul.f32 %v3526_v11, %v536_v1 }
  0xa7   : > { %v2619_v5 = vpop.eup %2618  ;;  %2638 = vtanh.f32 %v1013_v63  ;;  %v1027_v29 = vadd.f32 %v963_v18, %v621_v21  ;;  %v959_v32 = vmul.f32 %v3528_v12, %v536_v1 }
  0xa8   : > { %v2621_v8 = vpop.eup %2620  ;;  %2640 = vtanh.f32 %v1014_v4  ;;  %v551_v38 = vpop.permute.xlu1 %550 }
  0xa9   : > { %v2623_v17 = vpop.eup %2622  ;;  %v616_v22 = vpop.permute.xlu0 %615  ;;  %2642 = vtanh.f32 %v1015_v6  ;;  %v1132_v30 = vpack.c.bf16 %v2621_v8, %v3571_v56  ;;  %900 = vperm.xlu1 %2587, %v508_v31   ;;  %v968_v47 = vmul.f32 %v3522_v9, %v551_v38  ;;  %v969_v48 = vmul.f32 %v3524_v10, %v551_v38 }
  0xaa   : > { %v2625_v23 = vpop.eup %2624  ;;  %885 = vperm.xlu0 %2586, %v505_v16   ;;  %2644 = vtanh.f32 %v1024_v24  ;;  %v1020_v33 = vadd.f32 %v956_v19, %v616_v22  ;;  %v1133_v34 = vpack.c.bf16 %v2623_v17, %v2615_v60  ;;  %v1021_v35 = vadd.f32 %v957_v20, %v616_v22  ;;  %v512_v16 = vld [vmem:[%s3853_s10] sm:$0xff] }
  0xab   : > { %v2627_v27 = vpop.eup %2626  ;;  %2646 = vtanh.f32 %v1025_v25  ;;  %v1134_v37 = vpack.c.bf16 %v2625_v23, %v2617_v3  ;;  %v1022_v42 = vadd.f32 %v958_v28, %v616_v22  ;;  %v1023_v44 = vadd.f32 %v959_v32, %v616_v22 }
  0xac   : > { %v1135_v36 = vpack.c.bf16 %v2627_v27, %v2619_v5  ;;  %v2629_v41 = vpop.eup %2628  ;;  %2648 = vtanh.f32 %v1026_v26  ;;  %1212 = vmatprep.subr.bf16.mxu0 %v1133_v34  ;;  %v970_v49 = vmul.f32 %v3526_v11, %v551_v38  ;;  %v971_v51 = vmul.f32 %v3528_v12, %v551_v38  ;;  %v631_v53 = vpop.permute.xlu1 %630 }
  0xad   : > { %v546_v39 = vpop.permute.xlu0 %545  ;;  %v2631_v43 = vpop.eup %2630  ;;  %2650 = vtanh.f32 %v1027_v29  ;;  %1213 = vmatpush1.bf16.msra.mxu0 %v1132_v30  ;;  %v1032_v57 = vadd.f32 %v968_v47, %v631_v53  ;;  %v1033_v58 = vadd.f32 %v969_v48, %v631_v53  ;;  %910 = vperm.xlu1 %2587, %v510_v45  }
  0xae   : > { %1325 = vmatprep.subr.bf16.mxu1 %v1135_v36  ;;  %v2633_v46 = vpop.eup %2632  ;;  %2652 = vtanh.f32 %v1020_v33  ;;  %895 = vperm.xlu0 %2586, %v507_v40   ;;  %v964_v52 = vmul.f32 %v3522_v9, %v546_v39  ;;  %v1034_v59 = vadd.f32 %v970_v49, %v631_v53  ;;  %v965_v61 = vmul.f32 %v3524_v10, %v546_v39 }
  0xaf   : > { %1326 = vmatpush1.bf16.msra.mxu1 %v1134_v37  ;;  %v2635_v50 = vpop.eup %2634  ;;  %2654 = vtanh.f32 %v1021_v35  ;;  %v966_v63 = vmul.f32 %v3526_v11, %v546_v39  ;;  %v1035_v0 = vadd.f32 %v971_v51, %v631_v53  ;;  %v967_v3 = vmul.f32 %v3528_v12, %v546_v39 }
  0xb0   : > { %v2637_v56 = vpop.eup %2636  ;;  %2656 = vtanh.f32 %v1022_v42  ;;  %v561_v14 = vpop.permute.xlu1 %560 }
  0xb1   : > { %v626_v54 = vpop.permute.xlu0 %625  ;;  %v2639_v60 = vpop.eup %2638  ;;  %2658 = vtanh.f32 %v1023_v44  ;;  %v1136_v8 = vpack.c.bf16 %v2629_v41, %v2637_v56  ;;  %v976_v23 = vmul.f32 %v3522_v9, %v561_v14  ;;  %v977_v24 = vmul.f32 %v3524_v10, %v561_v14 }
  0xb2   : > { %v2641_v1 = vpop.eup %2640  ;;  %2660 = vtanh.f32 %v1032_v57  ;;  %v1028_v4 = vadd.f32 %v964_v52, %v626_v54  ;;  %v1137_v5 = vpack.c.bf16 %v2631_v43, %v2639_v60  ;;  %905 = vperm.xlu0 %2586, %v509_v55   ;;  %v1029_v7 = vadd.f32 %v965_v61, %v626_v54 }
  0xb3   : > { %v2643_v6 = vpop.eup %2642  ;;  %2662 = vtanh.f32 %v1033_v58  ;;  %v1138_v13 = vpack.c.bf16 %v2633_v46, %v2641_v1  ;;  %v1030_v18 = vadd.f32 %v966_v63, %v626_v54  ;;  %v1031_v21 = vadd.f32 %v967_v3, %v626_v54 }
  0xb4   : > { %v2645_v17 = vpop.eup %2644  ;;  %2664 = vtanh.f32 %v1034_v59  ;;  %1214 = vmatprep.subr.bf16.mxu0 %v1137_v5  ;;  %v1139_v19 = vpack.c.bf16 %v2635_v50, %v2643_v6  ;;  %v978_v25 = vmul.f32 %v3526_v11, %v561_v14  ;;  %v979_v27 = vmul.f32 %v3528_v12, %v561_v14  ;;  %v641_v29 = vpop.permute.xlu1 %640 }
  0xb5   : > { %v556_v15 = vpop.permute.xlu0 %555  ;;  %v2647_v20 = vpop.eup %2646  ;;  %2666 = vtanh.f32 %v1035_v0  ;;  %1215 = vmatpush1.bf16.msra.mxu0 %v1136_v8  ;;  %v1040_v32 = vadd.f32 %v976_v23, %v641_v29  ;;  %v1041_v33 = vadd.f32 %v977_v24, %v641_v29 }
  0xb6   : > { %v2649_v22 = vpop.eup %2648  ;;  %2668 = vtanh.f32 %v1028_v4  ;;  %1327 = vmatprep.subr.bf16.mxu1 %v1139_v19  ;;  %915 = vperm.xlu0 %2586, %v512_v16   ;;  %v972_v28 = vmul.f32 %v3522_v9, %v556_v15  ;;  %v1042_v34 = vadd.f32 %v978_v25, %v641_v29  ;;  %v973_v36 = vmul.f32 %v3524_v10, %v556_v15 }
  0xb7   : > { %v2651_v26 = vpop.eup %2650  ;;  %2670 = vtanh.f32 %v1029_v7  ;;  %1328 = vmatpush1.bf16.msra.mxu1 %v1138_v13  ;;  %v974_v37 = vmul.f32 %v3526_v11, %v556_v15  ;;  %v1043_v38 = vadd.f32 %v979_v27, %v641_v29  ;;  %v975_v40 = vmul.f32 %v3528_v12, %v556_v15 }
  0xb8   : > { %v2653_v31 = vpop.eup %2652  ;;  %2672 = vtanh.f32 %v1030_v18  ;;  %v571_v47 = vpop.permute.xlu1 %570 }
  0xb9   : > { %v636_v30 = vpop.permute.xlu0 %635  ;;  %v2655_v35 = vpop.eup %2654  ;;  %2674 = vtanh.f32 %v1031_v21  ;;  %v1140_v45 = vpack.c.bf16 %v2645_v17, %v2653_v31  ;;  %v984_v55 = vmul.f32 %v3522_v9, %v571_v47  ;;  %v985_v56 = vmul.f32 %v3524_v10, %v571_v47 }
  0xba   : > { %v2657_v39 = vpop.eup %2656  ;;  %2676 = vtanh.f32 %v1040_v32  ;;  %v1036_v41 = vadd.f32 %v972_v28, %v636_v30  ;;  %v1141_v42 = vpack.c.bf16 %v2647_v20, %v2655_v35  ;;  %v1037_v44 = vadd.f32 %v973_v36, %v636_v30 }
  0xbb   : > { %v2659_v43 = vpop.eup %2658  ;;  %2678 = vtanh.f32 %v1041_v33  ;;  %v1142_v46 = vpack.c.bf16 %v2649_v22, %v2657_v39  ;;  %v1038_v50 = vadd.f32 %v974_v37, %v636_v30  ;;  %v1039_v53 = vadd.f32 %v975_v40, %v636_v30 }
  0xbc   : > { %v2661_v49 = vpop.eup %2660  ;;  %2680 = vtanh.f32 %v1042_v34  ;;  %1216 = vmatprep.subr.bf16.mxu0 %v1141_v42  ;;  %v1143_v51 = vpack.c.bf16 %v2651_v26, %v2659_v43  ;;  %v986_v57 = vmul.f32 %v3526_v11, %v571_v47  ;;  %v987_v59 = vmul.f32 %v3528_v12, %v571_v47  ;;  %v651_v61 = vpop.permute.xlu1 %650 }
  0xbd   : > { %v566_v48 = vpop.permute.xlu0 %565  ;;  %v2663_v52 = vpop.eup %2662  ;;  %2682 = vtanh.f32 %v1043_v38  ;;  %1217 = vmatpush1.bf16.msra.mxu0 %v1140_v45  ;;  %v1048_v1 = vadd.f32 %v984_v55, %v651_v61  ;;  %v1049_v3 = vadd.f32 %v985_v56, %v651_v61 }
  0xbe   : > { %v2665_v54 = vpop.eup %2664  ;;  %2684 = vtanh.f32 %v1036_v41  ;;  %1329 = vmatprep.subr.bf16.mxu1 %v1143_v51  ;;  %v980_v60 = vmul.f32 %v3522_v9, %v566_v48  ;;  %v1050_v4 = vadd.f32 %v986_v57, %v651_v61  ;;  %v981_v6 = vmul.f32 %v3524_v10, %v566_v48 }
  0xbf   : > { %v2667_v58 = vpop.eup %2666  ;;  %2686 = vtanh.f32 %v1037_v44  ;;  %1330 = vmatpush1.bf16.msra.mxu1 %v1142_v46  ;;  %v982_v7 = vmul.f32 %v3526_v11, %v566_v48  ;;  %v1051_v8 = vadd.f32 %v987_v59, %v651_v61  ;;  %v983_v14 = vmul.f32 %v3528_v12, %v566_v48 }
  0xc0   : > { %v2669_v0 = vpop.eup %2668  ;;  %2688 = vtanh.f32 %v1038_v50  ;;  %v581_v21 = vpop.permute.xlu1 %580 }
  0xc1   : > { %v646_v63 = vpop.permute.xlu0 %645  ;;  %v2671_v5 = vpop.eup %2670  ;;  %2690 = vtanh.f32 %v1039_v53  ;;  %v1144_v19 = vpack.c.bf16 %v2661_v49, %v2669_v0  ;;  %v992_v29 = vmul.f32 %v3522_v9, %v581_v21  ;;  %v993_v30 = vmul.f32 %v3524_v10, %v581_v21 }
  0xc2   : > { %v2673_v13 = vpop.eup %2672  ;;  %2692 = vtanh.f32 %v1048_v1  ;;  %v1044_v15 = vadd.f32 %v980_v60, %v646_v63  ;;  %v1145_v16 = vpack.c.bf16 %v2663_v52, %v2671_v5  ;;  %v1045_v18 = vadd.f32 %v981_v6, %v646_v63 }
  0xc3   : > { %v2675_v17 = vpop.eup %2674  ;;  %2694 = vtanh.f32 %v1049_v3  ;;  %v1146_v20 = vpack.c.bf16 %v2665_v54, %v2673_v13  ;;  %v1046_v24 = vadd.f32 %v982_v7, %v646_v63  ;;  %v1047_v27 = vadd.f32 %v983_v14, %v646_v63 }
  0xc4   : > { %v2677_v23 = vpop.eup %2676  ;;  %2696 = vtanh.f32 %v1050_v4  ;;  %1218 = vmatprep.subr.bf16.mxu0 %v1145_v16  ;;  %v1147_v25 = vpack.c.bf16 %v2667_v58, %v2675_v17  ;;  %v994_v31 = vmul.f32 %v3526_v11, %v581_v21  ;;  %v995_v33 = vmul.f32 %v3528_v12, %v581_v21  ;;  %v661_v35 = vpop.permute.xlu1 %660 }
  0xc5   : > { %v576_v22 = vpop.permute.xlu0 %575  ;;  %v2679_v26 = vpop.eup %2678  ;;  %2698 = vtanh.f32 %v1051_v8  ;;  %1219 = vmatpush1.bf16.msra.mxu0 %v1144_v19  ;;  %v1056_v38 = vadd.f32 %v992_v29, %v661_v35  ;;  %v1057_v39 = vadd.f32 %v993_v30, %v661_v35 }
  0xc6   : > { %v2681_v28 = vpop.eup %2680  ;;  %2700 = vtanh.f32 %v1044_v15  ;;  %1331 = vmatprep.subr.bf16.mxu1 %v1147_v25  ;;  %v988_v34 = vmul.f32 %v3522_v9, %v576_v22  ;;  %v1058_v40 = vadd.f32 %v994_v31, %v661_v35  ;;  %v989_v42 = vmul.f32 %v3524_v10, %v576_v22 }
  0xc7   : > { %v2683_v32 = vpop.eup %2682  ;;  %2702 = vtanh.f32 %v1045_v18  ;;  %1332 = vmatpush1.bf16.msra.mxu1 %v1146_v20  ;;  %v990_v43 = vmul.f32 %v3526_v11, %v576_v22  ;;  %v1059_v44 = vadd.f32 %v995_v33, %v661_v35  ;;  %v991_v46 = vmul.f32 %v3528_v12, %v576_v22 }
  0xc8   : > { %v2685_v37 = vpop.eup %2684  ;;  %2704 = vtanh.f32 %v1046_v24  ;;  %v591_v53 = vpop.permute.xlu1 %590 }
  0xc9   : > { %v656_v36 = vpop.permute.xlu0 %655  ;;  %v2687_v41 = vpop.eup %2686  ;;  %2706 = vtanh.f32 %v1047_v27  ;;  %v1148_v51 = vpack.c.bf16 %v2677_v23, %v2685_v37  ;;  %v1000_v61 = vmul.f32 %v3522_v9, %v591_v53  ;;  %v1001_v63 = vmul.f32 %v3524_v10, %v591_v53 }
  0xca   : > { %v2689_v45 = vpop.eup %2688  ;;  %2708 = vtanh.f32 %v1056_v38  ;;  %v1052_v47 = vadd.f32 %v988_v34, %v656_v36  ;;  %v1149_v48 = vpack.c.bf16 %v2679_v26, %v2687_v41  ;;  %v1053_v50 = vadd.f32 %v989_v42, %v656_v36 }
  0xcb   : > { %v2691_v49 = vpop.eup %2690  ;;  %2710 = vtanh.f32 %v1057_v39  ;;  %v1150_v52 = vpack.c.bf16 %v2681_v28, %v2689_v45  ;;  %v1054_v56 = vadd.f32 %v990_v43, %v656_v36  ;;  %v1055_v59 = vadd.f32 %v991_v46, %v656_v36 }
  0xcc   : > { %v2693_v55 = vpop.eup %2692  ;;  %2712 = vtanh.f32 %v1058_v40  ;;  %1220 = vmatprep.subr.bf16.mxu0 %v1149_v48  ;;  %v1151_v57 = vpack.c.bf16 %v2683_v32, %v2691_v49  ;;  %v1002_v0 = vmul.f32 %v3526_v11, %v591_v53  ;;  %v1003_v3 = vmul.f32 %v3528_v12, %v591_v53  ;;  %v671_v5 = vpop.permute.xlu1 %670  ;;  %v2591_v53 = vld [vmem:[%s3846_s3 + $0x18] sm:$0xff]  }
  0xcd   : > { %v586_v54 = vpop.permute.xlu0 %585  ;;  %v2695_v58 = vpop.eup %2694  ;;  %2714 = vtanh.f32 %v1059_v44  ;;  %1221 = vmatpush1.bf16.msra.mxu0 %v1148_v51  ;;  %v1064_v8 = vadd.f32 %v1000_v61, %v671_v5  ;;  %v1065_v13 = vadd.f32 %v1001_v63, %v671_v5  ;;  %v2589_v51 = vld [vmem:[%s3846_s3 + $0x8] sm:$0xff]  }
  0xce   : > { %v2697_v60 = vpop.eup %2696  ;;  %2716 = vtanh.f32 %v1052_v47  ;;  %1333 = vmatprep.subr.bf16.mxu1 %v1151_v57  ;;  %v996_v4 = vmul.f32 %v3522_v9, %v586_v54  ;;  %v1066_v14 = vadd.f32 %v1002_v0, %v671_v5  ;;  %v997_v16 = vmul.f32 %v3524_v10, %v586_v54  ;;  %v2595_v57 = vld [vmem:[%s3846_s3 + $0x38] sm:$0xff]  }
  0xcf   : > { %v2699_v1 = vpop.eup %2698  ;;  %2718 = vtanh.f32 %v1053_v50  ;;  %1334 = vmatpush1.bf16.msra.mxu1 %v1150_v52  ;;  %v998_v17 = vmul.f32 %v3526_v11, %v586_v54  ;;  %v1067_v18 = vadd.f32 %v1003_v3, %v671_v5  ;;  %v999_v20 = vmul.f32 %v3528_v12, %v586_v54  ;;  %v2588_v50 = vld [vmem:[%s3846_s3] sm:$0xff]   ;;  %v2590_v52 = vld [vmem:[%s3846_s3 + $0x10] sm:$0xff]  }
  0xd0   : > { %v2701_v7 = vpop.eup %2700  ;;  %2720 = vtanh.f32 %v1054_v56  ;;  %v2592_v54 = vld [vmem:[%s3846_s3 + $0x20] sm:$0xff]   ;;  %v2594_v56 = vld [vmem:[%s3846_s3 + $0x30] sm:$0xff]  }
  0xd1   : > { %v666_v6 = vpop.permute.xlu0 %665  ;;  %v2703_v15 = vpop.eup %2702  ;;  %2722 = vtanh.f32 %v1055_v59  ;;  %v1152_v24 = vpack.c.bf16 %v2693_v55, %v2701_v7  ;;  %v2593_v55 = vld [vmem:[%s3846_s3 + $0x28] sm:$0xff]  }
  0xd2   : > { %v2705_v19 = vpop.eup %2704  ;;  %2724 = vtanh.f32 %v1064_v8  ;;  %v1060_v21 = vadd.f32 %v996_v4, %v666_v6  ;;  %v1153_v9 = vpack.c.bf16 %v2695_v58, %v2703_v15  ;;  %v1061_v23 = vadd.f32 %v997_v16, %v666_v6 }
  0xd3   : > { %v2707_v22 = vpop.eup %2706  ;;  %2726 = vtanh.f32 %v1065_v13  ;;  %v1154_v25 = vpack.c.bf16 %v2697_v60, %v2705_v19  ;;  %v1062_v27 = vadd.f32 %v998_v17, %v666_v6  ;;  %v1063_v11 = vadd.f32 %v999_v20, %v666_v6  ;;  %v681_v60 = vpop.permute.xlu1 %680 }
  0xd4   : > { %v2709_v26 = vpop.eup %2708  ;;  %2728 = vtanh.f32 %v1066_v14  ;;  %1222 = vmatprep.subr.bf16.mxu0 %v1153_v9  ;;  %v1155_v28 = vpack.c.bf16 %v2699_v1, %v2707_v22 }
  0xd5   : > { %v2711_v10 = vpop.eup %2710  ;;  %2730 = vtanh.f32 %v1067_v18  ;;  %1223 = vmatpush1.bf16.msra.mxu0 %v1152_v24  ;;  %v676_v58 = vpop.permute.xlu0 %675 }
  0xd6   : > { %v2713_v29 = vpop.eup %2712  ;;  %2732 = vtanh.f32 %v1060_v21  ;;  %1335 = vmatprep.subr.bf16.mxu1 %v1155_v28 }
  0xd7   : > { %v2715_v12 = vpop.eup %2714  ;;  %2734 = vtanh.f32 %v1061_v23  ;;  %1336 = vmatpush1.bf16.msra.mxu1 %v1154_v25  ;;  %v691_v20 = vpop.permute.xlu1 %690 }
  0xd8   : > { %v2717_v30 = vpop.eup %2716  ;;  %2736 = vtanh.f32 %v1062_v27 }
  0xd9   : > { %v2719_v31 = vpop.eup %2718  ;;  %2738 = vtanh.f32 %v1063_v11  ;;  %v1156_v32 = vpack.c.bf16 %v2709_v26, %v2717_v30  ;;  %v686_v18 = vpop.permute.xlu0 %685 }
  0xda   : > { %v2721_v33 = vpop.eup %2720  ;;  %v1157_v34 = vpack.c.bf16 %v2711_v10, %v2719_v31 }
  0xdb   : > { %v2723_v35 = vpop.eup %2722  ;;  %v1158_v36 = vpack.c.bf16 %v2713_v29, %v2721_v33 }
  0xdc   : > { %v2725_v37 = vpop.eup %2724  ;;  %1224 = vmatprep.subr.bf16.mxu0 %v1157_v34  ;;  %v1159_v38 = vpack.c.bf16 %v2715_v12, %v2723_v35 }
  0xdd   : > { %v2727_v39 = vpop.eup %2726  ;;  %1225 = vmatpush1.bf16.msra.mxu0 %v1156_v32 }
  0xde   : > { %v2729_v40 = vpop.eup %2728  ;;  %1337 = vmatprep.subr.bf16.mxu1 %v1159_v38 }
  0xdf   : > { %v2731_v41 = vpop.eup %2730  ;;  %1338 = vmatpush1.bf16.msra.mxu1 %v1158_v36  ;;  %v696_v36 = vpop.permute.xlu0 %695 }
  0xe0   : > { %v2733_v42 = vpop.eup %2732 }
  0xe1   : > { %v2735_v43 = vpop.eup %2734  ;;  %v1160_v44 = vpack.c.bf16 %v2725_v37, %v2733_v42 }
  0xe2   : > { %v2737_v45 = vpop.eup %2736  ;;  %v1161_v46 = vpack.c.bf16 %v2727_v39, %v2735_v43  ;;  %v701_v39 = vpop.permute.xlu1 %700 }
  0xe3   : > { %v2739_v47 = vpop.eup %2738  ;;  %v1162_v48 = vpack.c.bf16 %v2729_v40, %v2737_v45 }
  0xe4   : > { %1226 = vmatprep.subr.bf16.mxu0 %v1161_v46  ;;  %v1163_v49 = vpack.c.bf16 %v2731_v41, %v2739_v47 }
  0xe5   : > { %1227 = vmatpush1.bf16.msra.mxu0 %v1160_v44 }
  0xe6   : > { %1339 = vmatprep.subr.bf16.mxu1 %v1163_v49 }
  0xe7   : > { %1340 = vmatpush1.bf16.msra.mxu1 %v1162_v48 }
  0xe8   : > { %1245 = vmatmul.mubr.bf16.vlgmr.msra.gmra.mrb[0].mxu0 %v2588_v50 }
  0xe9   : > { %1254 = vmatprep.mubr.bf16.mxu0 %v3204_v2 }
  0xea   : > { %1358 = vmatmul.mubr.bf16.vlgmr.msra.gmra.mrb[0].mxu1 %v2588_v50 }
  0xeb   : > { %1367 = vmatprep.mubr.bf16.mxu1 %v3204_v2 }
  0xf0   : > { %1255 = vmatmul.mubr.bf16.gmra.mrb[4].mxu0 %v2589_v51 }
  0xf1   : > { %1264 = vmatprep.mubr.bf16.mxu0 %v3204_v2 }
  0xf2   : > { %1368 = vmatmul.mubr.bf16.gmra.mrb[4].mxu1 %v2589_v51 }
  0xf3   : > { %1377 = vmatprep.mubr.bf16.mxu1 %v3204_v2 }
  0xf8   : > { %1265 = vmatmul.mubr.bf16.gmra.mrb[8].mxu0 %v2590_v52 }
  0xf9   : > { %1274 = vmatprep.mubr.bf16.mxu0 %v3204_v2 }
  0xfa   : > { %1378 = vmatmul.mubr.bf16.gmra.mrb[8].mxu1 %v2590_v52 }
  0xfb   : > { %1387 = vmatprep.mubr.bf16.mxu1 %v3204_v2 }
 0x100   : > { %1275 = vmatmul.mubr.bf16.gmra.mrb[12].mxu0 %v2591_v53 }
 0x101   : > { %1284 = vmatprep.mubr.bf16.mxu0 %v3204_v2 }
 0x102   : > { %1388 = vmatmul.mubr.bf16.gmra.mrb[12].mxu1 %v2591_v53 }
 0x103   : > { %1397 = vmatprep.mubr.bf16.mxu1 %v3204_v2 }
 0x108   : > { %1285 = vmatmul.mubr.bf16.gmra.mrb[16].mxu0 %v2592_v54 }
 0x109   : > { %1294 = vmatprep.mubr.bf16.mxu0 %v3204_v2 }
 0x10a   : > { %1398 = vmatmul.mubr.bf16.gmra.mrb[16].mxu1 %v2592_v54 }
 0x10b   : > { %1407 = vmatprep.mubr.bf16.mxu1 %v3204_v2 }
 0x110   : > { %1295 = vmatmul.mubr.bf16.gmra.mrb[20].mxu0 %v2593_v55 }
 0x111   : > { %1304 = vmatprep.mubr.bf16.mxu0 %v3204_v2 }
 0x112   : > { %1408 = vmatmul.mubr.bf16.gmra.mrb[20].mxu1 %v2593_v55 }
 0x113   : > { %1417 = vmatprep.mubr.bf16.mxu1 %v3204_v2 }
 0x118   : > { %1305 = vmatmul.mubr.bf16.gmra.mrb[24].mxu0 %v2594_v56 }
 0x119   : > { %1314 = vmatprep.mubr.bf16.mxu0 %v3204_v2 }
 0x11a   : > { %1418 = vmatmul.mubr.bf16.gmra.mrb[24].mxu1 %v2594_v56 }
 0x11b   : > { %1427 = vmatprep.mubr.bf16.mxu1 %v3204_v2 }
 0x120   : > { %1315 = vmatmul.mubr.bf16.gmra.mrb[28].mxu0 %v2595_v57 }
 0x121   : > { %1614 = vmatprep.mubr.bf16.mxu0 %v3204_v2 }
 0x122   : > { %1428 = vmatmul.mubr.bf16.gmra.mrb[28].mxu1 %v2595_v57 }
 0x123   : > { %1727 = vmatprep.mubr.bf16.mxu1 %v3204_v2 }
 0x1bb   : > { %v1246_v59 = vpop.f32.mrb[0].mxu0 }
 0x1bc   : > { %v1247_v61 = vadd.f32 %v1246_v59, %v676_v58  ;;  %v1248_v63 = vpop.f32.mrb[1].mxu0 }
 0x1bd   : > { %v1359_v0 = vpop.f32.mrb[0].mxu1  ;;  %v1249_v1 = vadd.f32 %v1248_v63, %v676_v58  ;;  %v1250_v3 = vpop.f32.mrb[2].mxu0 }
 0x1be   : > { %2740 = vtanh.f32 %v1247_v61  ;;  %v1360_v4 = vadd.f32 %v1359_v0, %v676_v58  ;;  %v1361_v5 = vpop.f32.mrb[1].mxu1  ;;  %v1251_v6 = vadd.f32 %v1250_v3, %v681_v60  ;;  %v1252_v7 = vpop.f32.mrb[3].mxu0 }
 0x1bf   : > { %2742 = vtanh.f32 %v1249_v1  ;;  %v1362_v8 = vadd.f32 %v1361_v5, %v676_v58  ;;  %v1363_v13 = vpop.f32.mrb[2].mxu1  ;;  %v1253_v15 = vadd.f32 %v1252_v7, %v681_v60  ;;  %v711_v7 = vpop.permute.xlu1 %710 }
 0x1c0   : > { %2744 = vtanh.f32 %v1360_v4  ;;  %v1364_v14 = vadd.f32 %v1363_v13, %v681_v60  ;;  %v1365_v16 = vpop.f32.mrb[3].mxu1  ;;  %v706_v4 = vpop.permute.xlu0 %705 }
 0x1c1   : > { %2746 = vtanh.f32 %v1362_v8  ;;  %v1366_v17 = vadd.f32 %v1365_v16, %v681_v60 }
 0x1c2   : > { %2748 = vtanh.f32 %v1251_v6 }
 0x1c3   : > { %2750 = vtanh.f32 %v1364_v14  ;;  %v1256_v19 = vpop.f32.mrb[4].mxu0 }
 0x1c4   : > { %2752 = vtanh.f32 %v1253_v15  ;;  %v1257_v21 = vadd.f32 %v1256_v19, %v686_v18  ;;  %v1258_v9 = vpop.f32.mrb[5].mxu0 }
 0x1c5   : > { %2754 = vtanh.f32 %v1366_v17  ;;  %v1369_v22 = vpop.f32.mrb[4].mxu1  ;;  %v1259_v23 = vadd.f32 %v1258_v9, %v686_v18  ;;  %v1260_v24 = vpop.f32.mrb[6].mxu0 }
 0x1c6   : > { %2756 = vtanh.f32 %v1257_v21  ;;  %v1370_v25 = vadd.f32 %v1369_v22, %v686_v18  ;;  %v1371_v26 = vpop.f32.mrb[5].mxu1  ;;  %v1261_v27 = vadd.f32 %v1260_v24, %v691_v20  ;;  %v1262_v28 = vpop.f32.mrb[7].mxu0 }
 0x1c7   : > { %2758 = vtanh.f32 %v1259_v23  ;;  %v1372_v10 = vadd.f32 %v1371_v26, %v686_v18  ;;  %v1373_v11 = vpop.f32.mrb[6].mxu1  ;;  %v1263_v30 = vadd.f32 %v1262_v28, %v691_v20 }
 0x1c8   : > { %v2741_v29 = vpop.eup %2740  ;;  %2760 = vtanh.f32 %v1370_v25  ;;  %v1374_v12 = vadd.f32 %v1373_v11, %v691_v20  ;;  %v1375_v31 = vpop.f32.mrb[7].mxu1 }
 0x1c9   : > { %v2743_v32 = vpop.eup %2742  ;;  %2762 = vtanh.f32 %v1372_v10  ;;  %v1376_v33 = vadd.f32 %v1375_v31, %v691_v20 }
 0x1ca   : > { %v2745_v34 = vpop.eup %2744  ;;  %2764 = vtanh.f32 %v1261_v27 }
 0x1cb   : > { %v2747_v35 = vpop.eup %2746  ;;  %2766 = vtanh.f32 %v1374_v12  ;;  %v1266_v37 = vpop.f32.mrb[8].mxu0 }
 0x1cc   : > { %v2749_v38 = vpop.eup %2748  ;;  %2768 = vtanh.f32 %v1263_v30  ;;  %v1267_v40 = vadd.f32 %v1266_v37, %v696_v36  ;;  %v1268_v41 = vpop.f32.mrb[9].mxu0 }
 0x1cd   : > { %v2751_v42 = vpop.eup %2750  ;;  %2770 = vtanh.f32 %v1376_v33  ;;  %v1379_v43 = vpop.f32.mrb[8].mxu1  ;;  %v1269_v44 = vadd.f32 %v1268_v41, %v696_v36  ;;  %v1502_v46 = vpack.c.bf16 %v2749_v38, %v2741_v29 }
 0x1ce   : > { %v1270_v45 = vpop.f32.mrb[10].mxu0  ;;  %v2753_v47 = vpop.eup %2752  ;;  %2772 = vtanh.f32 %v1267_v40  ;;  %v1380_v48 = vadd.f32 %v1379_v43, %v696_v36  ;;  %v1504_v52 = vpack.c.bf16 %v2751_v42, %v2745_v34 }
 0x1cf   : > { %v1381_v49 = vpop.f32.mrb[9].mxu1  ;;  %v1271_v50 = vadd.f32 %v1270_v45, %v701_v39  ;;  %v1272_v51 = vpop.f32.mrb[11].mxu0  ;;  %2774 = vtanh.f32 %v1269_v44  ;;  %v1503_v56 = vpack.c.bf16 %v2753_v47, %v2743_v32 }
 0x1d0   : > { %v2755_v53 = vpop.eup %2754  ;;  %v1382_v54 = vadd.f32 %v1381_v49, %v696_v36  ;;  %v1383_v55 = vpop.f32.mrb[10].mxu1  ;;  %2776 = vtanh.f32 %v1380_v48  ;;  %v1273_v59 = vadd.f32 %v1272_v51, %v701_v39 }
 0x1d1   : > { %v2757_v57 = vpop.eup %2756  ;;  %v1384_v58 = vadd.f32 %v1383_v55, %v701_v39  ;;  %v1385_v60 = vpop.f32.mrb[11].mxu1  ;;  %v1505_v61 = vpack.c.bf16 %v2755_v53, %v2747_v35  ;;  %1582 = vmatprep.subr.bf16.mxu0 %v1503_v56 }
 0x1d2   : > { %v2759_v63 = vpop.eup %2758  ;;  %2778 = vtanh.f32 %v1382_v54  ;;  %v1386_v0 = vadd.f32 %v1385_v60, %v701_v39  ;;  %1583 = vmatpush1.bf16.msra.mxu0 %v1502_v46  ;;  %v716_v34 = vpop.permute.xlu0 %715 }
 0x1d3   : > { %v2761_v1 = vpop.eup %2760  ;;  %2780 = vtanh.f32 %v1271_v50  ;;  %1695 = vmatprep.subr.bf16.mxu1 %v1505_v61  ;;  %v1276_v5 = vpop.f32.mrb[12].mxu0 }
 0x1d4   : > { %v2763_v3 = vpop.eup %2762  ;;  %2782 = vtanh.f32 %v1384_v58  ;;  %1696 = vmatpush1.bf16.msra.mxu1 %v1504_v52  ;;  %v1277_v8 = vadd.f32 %v1276_v5, %v706_v4  ;;  %v1278_v13 = vpop.f32.mrb[13].mxu0 }
 0x1d5   : > { %v2765_v6 = vpop.eup %2764  ;;  %2784 = vtanh.f32 %v1273_v59  ;;  %v1389_v15 = vpop.f32.mrb[12].mxu1  ;;  %v1279_v16 = vadd.f32 %v1278_v13, %v706_v4 }
 0x1d6   : > { %v2767_v14 = vpop.eup %2766  ;;  %2786 = vtanh.f32 %v1386_v0  ;;  %v1280_v17 = vpop.f32.mrb[14].mxu0  ;;  %v1506_v18 = vpack.c.bf16 %v2765_v6, %v2757_v57  ;;  %v1390_v20 = vadd.f32 %v1389_v15, %v706_v4 }
 0x1d7   : > { %v2769_v19 = vpop.eup %2768  ;;  %2788 = vtanh.f32 %v1277_v8  ;;  %v1391_v21 = vpop.f32.mrb[13].mxu1  ;;  %v1281_v9 = vadd.f32 %v1280_v17, %v711_v7  ;;  %v1508_v23 = vpack.c.bf16 %v2767_v14, %v2761_v1 }
 0x1d8   : > { %v1282_v22 = vpop.f32.mrb[15].mxu0  ;;  %v2771_v24 = vpop.eup %2770  ;;  %2790 = vtanh.f32 %v1279_v16  ;;  %v1392_v25 = vadd.f32 %v1391_v21, %v706_v4  ;;  %v1507_v27 = vpack.c.bf16 %v2769_v19, %v2759_v63 }
 0x1d9   : > { %v1393_v26 = vpop.f32.mrb[14].mxu1  ;;  %v2773_v28 = vpop.eup %2772  ;;  %2792 = vtanh.f32 %v1390_v20  ;;  %v1283_v11 = vadd.f32 %v1282_v22, %v711_v7  ;;  %v1509_v12 = vpack.c.bf16 %v2771_v24, %v2763_v3 }
 0x1da   : > { %v1394_v10 = vadd.f32 %v1393_v26, %v711_v7  ;;  %v1395_v29 = vpop.f32.mrb[15].mxu1  ;;  %v2775_v30 = vpop.eup %2774  ;;  %2794 = vtanh.f32 %v1392_v25  ;;  %1584 = vmatprep.subr.bf16.mxu0 %v1507_v27 }
 0x1db   : > { %v1396_v31 = vadd.f32 %v1395_v29, %v711_v7  ;;  %v2777_v32 = vpop.eup %2776  ;;  %2796 = vtanh.f32 %v1281_v9  ;;  %1697 = vmatprep.subr.bf16.mxu1 %v1509_v12  ;;  %1585 = vmatpush1.bf16.msra.mxu0 %v1506_v18  ;;  %v1286_v35 = vpop.f32.mrb[16].mxu0 }
 0x1dc   : > { %v2779_v33 = vpop.eup %2778  ;;  %2798 = vtanh.f32 %v1394_v10  ;;  %1698 = vmatpush1.bf16.msra.mxu1 %v1508_v23  ;;  %v721_v37 = vpop.permute.xlu1 %720  ;;  %v1287_v38 = vadd.f32 %v1286_v35, %v716_v34 }
 0x1dd   : > { %v2781_v36 = vpop.eup %2780  ;;  %2800 = vtanh.f32 %v1283_v11  ;;  %v1288_v39 = vpop.f32.mrb[17].mxu0 }
 0x1de   : > { %v2783_v40 = vpop.eup %2782  ;;  %2802 = vtanh.f32 %v1396_v31  ;;  %v1399_v41 = vpop.f32.mrb[16].mxu1  ;;  %v1289_v42 = vadd.f32 %v1288_v39, %v716_v34  ;;  %v1510_v44 = vpack.c.bf16 %v2781_v36, %v2773_v28 }
 0x1df   : > { %v1290_v43 = vpop.f32.mrb[18].mxu0  ;;  %v2785_v45 = vpop.eup %2784  ;;  %2804 = vtanh.f32 %v1287_v38  ;;  %v1400_v46 = vadd.f32 %v1399_v41, %v716_v34  ;;  %v1512_v50 = vpack.c.bf16 %v2783_v40, %v2777_v32 }
 0x1e0   : > { %v1401_v47 = vpop.f32.mrb[17].mxu1  ;;  %v1291_v48 = vadd.f32 %v1290_v43, %v721_v37  ;;  %v1292_v49 = vpop.f32.mrb[19].mxu0  ;;  %2806 = vtanh.f32 %v1289_v42  ;;  %v1511_v54 = vpack.c.bf16 %v2785_v45, %v2775_v30 }
 0x1e1   : > { %v2787_v51 = vpop.eup %2786  ;;  %v1402_v52 = vadd.f32 %v1401_v47, %v716_v34  ;;  %v1403_v53 = vpop.f32.mrb[18].mxu1  ;;  %2808 = vtanh.f32 %v1400_v46  ;;  %v1293_v57 = vadd.f32 %v1292_v49, %v721_v37 }
 0x1e2   : > { %v2789_v55 = vpop.eup %2788  ;;  %v1404_v56 = vadd.f32 %v1403_v53, %v721_v37  ;;  %v1405_v58 = vpop.f32.mrb[19].mxu1  ;;  %v1513_v59 = vpack.c.bf16 %v2787_v51, %v2779_v33  ;;  %1586 = vmatprep.subr.bf16.mxu0 %v1511_v54 }
 0x1e3   : > { %v2791_v60 = vpop.eup %2790  ;;  %2810 = vtanh.f32 %v1402_v52  ;;  %v1406_v61 = vadd.f32 %v1405_v58, %v721_v37  ;;  %1587 = vmatpush1.bf16.msra.mxu0 %v1510_v44  ;;  %v726_v1 = vpop.permute.xlu0 %725 }
 0x1e4   : > { %v2793_v63 = vpop.eup %2792  ;;  %2812 = vtanh.f32 %v1291_v48  ;;  %1699 = vmatprep.subr.bf16.mxu1 %v1513_v59  ;;  %v1296_v3 = vpop.f32.mrb[20].mxu0 }
 0x1e5   : > { %v2795_v0 = vpop.eup %2794  ;;  %2814 = vtanh.f32 %v1404_v56  ;;  %1700 = vmatpush1.bf16.msra.mxu1 %v1512_v50  ;;  %v731_v5 = vpop.permute.xlu1 %730  ;;  %v1297_v6 = vadd.f32 %v1296_v3, %v726_v1 }
 0x1e6   : > { %v2797_v4 = vpop.eup %2796  ;;  %2816 = vtanh.f32 %v1293_v57  ;;  %v1298_v7 = vpop.f32.mrb[21].mxu0 }
 0x1e7   : > { %v2799_v8 = vpop.eup %2798  ;;  %2818 = vtanh.f32 %v1406_v61  ;;  %v1409_v13 = vpop.f32.mrb[20].mxu1  ;;  %v1299_v14 = vadd.f32 %v1298_v7, %v726_v1  ;;  %v1514_v16 = vpack.c.bf16 %v2797_v4, %v2789_v55 }
 0x1e8   : > { %v1300_v15 = vpop.f32.mrb[22].mxu0  ;;  %v2801_v17 = vpop.eup %2800  ;;  %2820 = vtanh.f32 %v1297_v6  ;;  %v1410_v18 = vadd.f32 %v1409_v13, %v726_v1  ;;  %v1516_v9 = vpack.c.bf16 %v2799_v8, %v2793_v63 }
 0x1e9   : > { %v1411_v19 = vpop.f32.mrb[21].mxu1  ;;  %v1301_v20 = vadd.f32 %v1300_v15, %v731_v5  ;;  %v1302_v21 = vpop.f32.mrb[23].mxu0  ;;  %2822 = vtanh.f32 %v1299_v14  ;;  %v1515_v25 = vpack.c.bf16 %v2801_v17, %v2791_v60 }
 0x1ea   : > { %v2803_v22 = vpop.eup %2802  ;;  %v1412_v23 = vadd.f32 %v1411_v19, %v726_v1  ;;  %v1413_v24 = vpop.f32.mrb[22].mxu1  ;;  %2824 = vtanh.f32 %v1410_v18  ;;  %v1303_v28 = vadd.f32 %v1302_v21, %v731_v5 }
 0x1eb   : > { %v2805_v26 = vpop.eup %2804  ;;  %v1414_v27 = vadd.f32 %v1413_v24, %v731_v5  ;;  %v1415_v10 = vpop.f32.mrb[23].mxu1  ;;  %v1517_v11 = vpack.c.bf16 %v2803_v22, %v2795_v0  ;;  %1588 = vmatprep.subr.bf16.mxu0 %v1515_v25 }
 0x1ec   : > { %v2807_v29 = vpop.eup %2806  ;;  %2826 = vtanh.f32 %v1412_v23  ;;  %v1416_v12 = vadd.f32 %v1415_v10, %v731_v5  ;;  %1589 = vmatpush1.bf16.msra.mxu0 %v1514_v16  ;;  %v736_v32 = vpop.permute.xlu0 %735 }
 0x1ed   : > { %v2809_v30 = vpop.eup %2808  ;;  %2828 = vtanh.f32 %v1301_v20  ;;  %1701 = vmatprep.subr.bf16.mxu1 %v1517_v11  ;;  %v1306_v33 = vpop.f32.mrb[24].mxu0 }
 0x1ee   : > { %v2811_v31 = vpop.eup %2810  ;;  %2830 = vtanh.f32 %v1414_v27  ;;  %1702 = vmatpush1.bf16.msra.mxu1 %v1516_v9  ;;  %v741_v35 = vpop.permute.xlu1 %740  ;;  %v1307_v36 = vadd.f32 %v1306_v33, %v736_v32 }
 0x1ef   : > { %v2813_v34 = vpop.eup %2812  ;;  %2832 = vtanh.f32 %v1303_v28  ;;  %v1308_v37 = vpop.f32.mrb[25].mxu0 }
 0x1f0   : > { %v2815_v38 = vpop.eup %2814  ;;  %2834 = vtanh.f32 %v1416_v12  ;;  %v1419_v39 = vpop.f32.mrb[24].mxu1  ;;  %v1309_v40 = vadd.f32 %v1308_v37, %v736_v32  ;;  %v1518_v42 = vpack.c.bf16 %v2813_v34, %v2805_v26 }
 0x1f1   : > { %v1310_v41 = vpop.f32.mrb[26].mxu0  ;;  %v2817_v43 = vpop.eup %2816  ;;  %2836 = vtanh.f32 %v1307_v36  ;;  %v1420_v44 = vadd.f32 %v1419_v39, %v736_v32  ;;  %v1520_v48 = vpack.c.bf16 %v2815_v38, %v2809_v30 }
 0x1f2   : > { %v1421_v45 = vpop.f32.mrb[25].mxu1  ;;  %v1311_v46 = vadd.f32 %v1310_v41, %v741_v35  ;;  %v1312_v47 = vpop.f32.mrb[27].mxu0  ;;  %2838 = vtanh.f32 %v1309_v40  ;;  %v1519_v52 = vpack.c.bf16 %v2817_v43, %v2807_v29 }
 0x1f3   : > { %v2819_v49 = vpop.eup %2818  ;;  %v1422_v50 = vadd.f32 %v1421_v45, %v736_v32  ;;  %v1423_v51 = vpop.f32.mrb[26].mxu1  ;;  %2840 = vtanh.f32 %v1420_v44  ;;  %v1313_v55 = vadd.f32 %v1312_v47, %v741_v35 }
 0x1f4   : > { %v2821_v53 = vpop.eup %2820  ;;  %v1424_v54 = vadd.f32 %v1423_v51, %v741_v35  ;;  %v1425_v56 = vpop.f32.mrb[27].mxu1  ;;  %v1521_v57 = vpack.c.bf16 %v2819_v49, %v2811_v31  ;;  %1590 = vmatprep.subr.bf16.mxu0 %v1519_v52  ;;  %v2597_v51 = vld [vmem:[%s3848_s5 + $0x8] sm:$0xff]   ;;  %v2598_v52 = vld [vmem:[%s3848_s5 + $0x10] sm:$0xff]  }
 0x1f5   : > { %v2823_v58 = vpop.eup %2822  ;;  %2842 = vtanh.f32 %v1422_v50  ;;  %v1426_v59 = vadd.f32 %v1425_v56, %v741_v35  ;;  %1591 = vmatpush1.bf16.msra.mxu0 %v1518_v42  ;;  %v746_v63 = vpop.permute.xlu0 %745  ;;  %v2596_v50 = vld [vmem:[%s3848_s5] sm:$0xff]   ;;  %v2602_v56 = vld [vmem:[%s3848_s5 + $0x30] sm:$0xff]  }
 0x1f6   : > { %v2825_v60 = vpop.eup %2824  ;;  %2844 = vtanh.f32 %v1311_v46  ;;  %1703 = vmatprep.subr.bf16.mxu1 %v1521_v57  ;;  %v1316_v0 = vpop.f32.mrb[28].mxu0  ;;  %v2603_v57 = vld [vmem:[%s3848_s5 + $0x38] sm:$0xff]  }
 0x1f7   : > { %v2827_v61 = vpop.eup %2826  ;;  %2846 = vtanh.f32 %v1424_v54  ;;  %1704 = vmatpush1.bf16.msra.mxu1 %v1520_v48  ;;  %v751_v3 = vpop.permute.xlu1 %750  ;;  %v1317_v4 = vadd.f32 %v1316_v0, %v746_v63  ;;  %v2600_v54 = vld [vmem:[%s3848_s5 + $0x20] sm:$0xff]  }
 0x1f8   : > { %v2829_v1 = vpop.eup %2828  ;;  %2848 = vtanh.f32 %v1313_v55  ;;  %v1318_v5 = vpop.f32.mrb[29].mxu0  ;;  %v2601_v55 = vld [vmem:[%s3848_s5 + $0x28] sm:$0xff]  }
 0x1f9   : > { %v2831_v6 = vpop.eup %2830  ;;  %2850 = vtanh.f32 %v1426_v59  ;;  %v1429_v7 = vpop.f32.mrb[28].mxu1  ;;  %v1319_v8 = vadd.f32 %v1318_v5, %v746_v63  ;;  %v1522_v14 = vpack.c.bf16 %v2829_v1, %v2821_v53  ;;  %v2599_v53 = vld [vmem:[%s3848_s5 + $0x18] sm:$0xff]  }
 0x1fa   : > { %v1320_v13 = vpop.f32.mrb[30].mxu0  ;;  %v2833_v15 = vpop.eup %2832  ;;  %2852 = vtanh.f32 %v1317_v4  ;;  %v1430_v16 = vadd.f32 %v1429_v7, %v746_v63  ;;  %v1524_v20 = vpack.c.bf16 %v2831_v6, %v2825_v60 }
 0x1fb   : > { %v1431_v17 = vpop.f32.mrb[29].mxu1  ;;  %v1321_v18 = vadd.f32 %v1320_v13, %v751_v3  ;;  %v1322_v19 = vpop.f32.mrb[31].mxu0  ;;  %2854 = vtanh.f32 %v1319_v8  ;;  %v1523_v23 = vpack.c.bf16 %v2833_v15, %v2823_v58 }
 0x1fc   : > { %v2835_v21 = vpop.eup %2834  ;;  %v1432_v9 = vadd.f32 %v1431_v17, %v746_v63  ;;  %v1433_v22 = vpop.f32.mrb[30].mxu1  ;;  %2856 = vtanh.f32 %v1430_v16  ;;  %v1323_v26 = vadd.f32 %v1322_v19, %v751_v3 }
 0x1fd   : > { %v2837_v24 = vpop.eup %2836  ;;  %v1434_v25 = vadd.f32 %v1433_v22, %v751_v3  ;;  %v1435_v27 = vpop.f32.mrb[31].mxu1  ;;  %v1525_v28 = vpack.c.bf16 %v2835_v21, %v2827_v61  ;;  %1592 = vmatprep.subr.bf16.mxu0 %v1523_v23 }
 0x1fe   : > { %v2839_v10 = vpop.eup %2838  ;;  %2858 = vtanh.f32 %v1432_v9  ;;  %v1436_v11 = vadd.f32 %v1435_v27, %v751_v3  ;;  %1593 = vmatpush1.bf16.msra.mxu0 %v1522_v14  ;;  %v761_v58 = vpop.permute.xlu1 %760 }
 0x1ff   : > { %v2841_v29 = vpop.eup %2840  ;;  %2860 = vtanh.f32 %v1321_v18  ;;  %1705 = vmatprep.subr.bf16.mxu1 %v1525_v28  ;;  %v756_v59 = vpop.permute.xlu0 %755 }
 0x200   : > { %v2843_v12 = vpop.eup %2842  ;;  %2862 = vtanh.f32 %v1434_v25  ;;  %1706 = vmatpush1.bf16.msra.mxu1 %v1524_v20 }
 0x201   : > { %v2845_v30 = vpop.eup %2844  ;;  %2864 = vtanh.f32 %v1323_v26 }
 0x202   : > { %v2847_v31 = vpop.eup %2846  ;;  %2866 = vtanh.f32 %v1436_v11  ;;  %v1526_v32 = vpack.c.bf16 %v2845_v30, %v2837_v24  ;;  %v771_v18 = vpop.permute.xlu1 %770 }
 0x203   : > { %v2849_v33 = vpop.eup %2848  ;;  %v1528_v34 = vpack.c.bf16 %v2847_v31, %v2841_v29  ;;  %v766_v19 = vpop.permute.xlu0 %765 }
 0x204   : > { %v2851_v35 = vpop.eup %2850  ;;  %v1527_v36 = vpack.c.bf16 %v2849_v33, %v2839_v10 }
 0x205   : > { %v2853_v37 = vpop.eup %2852  ;;  %v1529_v38 = vpack.c.bf16 %v2851_v35, %v2843_v12 }
 0x206   : > { %v2855_v39 = vpop.eup %2854  ;;  %1594 = vmatprep.subr.bf16.mxu0 %v1527_v36  ;;  %v781_v35 = vpop.permute.xlu1 %780 }
 0x207   : > { %v2857_v40 = vpop.eup %2856  ;;  %1707 = vmatprep.subr.bf16.mxu1 %v1529_v38  ;;  %1595 = vmatpush1.bf16.msra.mxu0 %v1526_v32 }
 0x208   : > { %v2859_v41 = vpop.eup %2858  ;;  %1708 = vmatpush1.bf16.msra.mxu1 %v1528_v34 }
 0x209   : > { %v2861_v42 = vpop.eup %2860 }
 0x20a   : > { %v2863_v43 = vpop.eup %2862  ;;  %v1530_v44 = vpack.c.bf16 %v2861_v42, %v2853_v37  ;;  %v776_v37 = vpop.permute.xlu0 %775 }
 0x20b   : > { %v2865_v45 = vpop.eup %2864  ;;  %v1532_v46 = vpack.c.bf16 %v2863_v43, %v2857_v40 }
 0x20c   : > { %v2867_v47 = vpop.eup %2866  ;;  %v1531_v48 = vpack.c.bf16 %v2865_v45, %v2855_v39 }
 0x20d   : > { %v1533_v49 = vpack.c.bf16 %v2867_v47, %v2859_v41 }
 0x20e   : > { %1596 = vmatprep.subr.bf16.mxu0 %v1531_v48 }
 0x20f   : > { %1709 = vmatprep.subr.bf16.mxu1 %v1533_v49  ;;  %1597 = vmatpush1.bf16.msra.mxu0 %v1530_v44 }
 0x210   : > { %1710 = vmatpush1.bf16.msra.mxu1 %v1532_v46 }
 0x212   : > { %1615 = vmatmul.mubr.bf16.vlgmr.msra.gmra.mrb[32].mxu0 %v2596_v50 }
 0x213   : > { %1728 = vmatmul.mubr.bf16.vlgmr.msra.gmra.mrb[32].mxu1 %v2596_v50  ;;  %1624 = vmatprep.mubr.bf16.mxu0 %v3204_v2 }
 0x214   : > { %1737 = vmatprep.mubr.bf16.mxu1 %v3204_v2 }
 0x21a   : > { %1625 = vmatmul.mubr.bf16.gmra.mrb[36].mxu0 %v2597_v51 }
 0x21b   : > { %1738 = vmatmul.mubr.bf16.gmra.mrb[36].mxu1 %v2597_v51  ;;  %1634 = vmatprep.mubr.bf16.mxu0 %v3204_v2 }
 0x21c   : > { %1747 = vmatprep.mubr.bf16.mxu1 %v3204_v2 }
 0x222   : > { %1635 = vmatmul.mubr.bf16.gmra.mrb[40].mxu0 %v2598_v52 }
 0x223   : > { %1748 = vmatmul.mubr.bf16.gmra.mrb[40].mxu1 %v2598_v52  ;;  %1644 = vmatprep.mubr.bf16.mxu0 %v3204_v2 }
 0x224   : > { %1757 = vmatprep.mubr.bf16.mxu1 %v3204_v2 }
 0x22a   : > { %1645 = vmatmul.mubr.bf16.gmra.mrb[44].mxu0 %v2599_v53 }
 0x22b   : > { %1758 = vmatmul.mubr.bf16.gmra.mrb[44].mxu1 %v2599_v53  ;;  %1654 = vmatprep.mubr.bf16.mxu0 %v3204_v2 }
 0x22c   : > { %1767 = vmatprep.mubr.bf16.mxu1 %v3204_v2 }
 0x232   : > { %1655 = vmatmul.mubr.bf16.gmra.mrb[48].mxu0 %v2600_v54 }
 0x233   : > { %1768 = vmatmul.mubr.bf16.gmra.mrb[48].mxu1 %v2600_v54  ;;  %1664 = vmatprep.mubr.bf16.mxu0 %v3204_v2 }
 0x234   : > { %1777 = vmatprep.mubr.bf16.mxu1 %v3204_v2 }
 0x23a   : > { %1665 = vmatmul.mubr.bf16.gmra.mrb[52].mxu0 %v2601_v55 }
 0x23b   : > { %1778 = vmatmul.mubr.bf16.gmra.mrb[52].mxu1 %v2601_v55  ;;  %1674 = vmatprep.mubr.bf16.mxu0 %v3204_v2 }
 0x23c   : > { %1787 = vmatprep.mubr.bf16.mxu1 %v3204_v2 }
 0x242   : > { %1675 = vmatmul.mubr.bf16.gmra.mrb[56].mxu0 %v2602_v56 }
 0x243   : > { %1788 = vmatmul.mubr.bf16.gmra.mrb[56].mxu1 %v2602_v56  ;;  %1684 = vmatprep.mubr.bf16.mxu0 %v3204_v2 }
 0x244   : > { %1797 = vmatprep.mubr.bf16.mxu1 %v3204_v2 }
 0x24a   : > { %1685 = vmatmul.mubr.bf16.gmra.mrb[60].mxu0 %v2603_v57 }
 0x24b   : > { %1798 = vmatmul.mubr.bf16.gmra.mrb[60].mxu1 %v2603_v57  ;;  %1984 = vmatprep.mubr.bf16.mxu0 %v3204_v2 }
 0x24c   : > { %2097 = vmatprep.mubr.bf16.mxu1 %v3204_v2 }
 0x2e5   : > { %v1616_v60 = vpop.f32.mrb[32].mxu0 }
 0x2e6   : > { %v1617_v61 = vadd.f32 %v1616_v60, %v756_v59  ;;  %v1729_v63 = vpop.f32.mrb[32].mxu1  ;;  %v1618_v0 = vpop.f32.mrb[33].mxu0 }
 0x2e7   : > { %v1730_v1 = vadd.f32 %v1729_v63, %v756_v59  ;;  %v1619_v3 = vadd.f32 %v1618_v0, %v756_v59  ;;  %v1731_v4 = vpop.f32.mrb[33].mxu1  ;;  %v1620_v5 = vpop.f32.mrb[34].mxu0 }
 0x2e8   : > { %2868 = vtanh.f32 %v1617_v61  ;;  %v1732_v6 = vadd.f32 %v1731_v4, %v756_v59  ;;  %v1621_v7 = vadd.f32 %v1620_v5, %v761_v58  ;;  %v1733_v8 = vpop.f32.mrb[34].mxu1  ;;  %v1622_v13 = vpop.f32.mrb[35].mxu0 }
 0x2e9   : > { %2870 = vtanh.f32 %v1730_v1  ;;  %v1734_v14 = vadd.f32 %v1733_v8, %v761_v58  ;;  %v1735_v15 = vpop.f32.mrb[35].mxu1  ;;  %v1623_v16 = vadd.f32 %v1622_v13, %v761_v58  ;;  %v786_v5 = vpop.permute.xlu0 %785 }
 0x2ea   : > { %2872 = vtanh.f32 %v1619_v3  ;;  %v1736_v17 = vadd.f32 %v1735_v15, %v761_v58  ;;  %v791_v3 = vpop.permute.xlu1 %790 }
 0x2eb   : > { %2874 = vtanh.f32 %v1732_v6 }
 0x2ec   : > { %2876 = vtanh.f32 %v1621_v7 }
 0x2ed   : > { %2878 = vtanh.f32 %v1734_v14  ;;  %v1626_v20 = vpop.f32.mrb[36].mxu0 }
 0x2ee   : > { %2880 = vtanh.f32 %v1623_v16  ;;  %v1627_v21 = vadd.f32 %v1626_v20, %v766_v19  ;;  %v1739_v9 = vpop.f32.mrb[36].mxu1  ;;  %v1628_v22 = vpop.f32.mrb[37].mxu0 }
 0x2ef   : > { %2882 = vtanh.f32 %v1736_v17  ;;  %v1740_v23 = vadd.f32 %v1739_v9, %v766_v19  ;;  %v1629_v24 = vadd.f32 %v1628_v22, %v766_v19  ;;  %v1741_v25 = vpop.f32.mrb[37].mxu1  ;;  %v1630_v26 = vpop.f32.mrb[38].mxu0 }
 0x2f0   : > { %2884 = vtanh.f32 %v1627_v21  ;;  %v1742_v27 = vadd.f32 %v1741_v25, %v766_v19  ;;  %v1631_v28 = vadd.f32 %v1630_v26, %v771_v18  ;;  %v1743_v10 = vpop.f32.mrb[38].mxu1  ;;  %v1632_v11 = vpop.f32.mrb[39].mxu0 }
 0x2f1   : > { %2886 = vtanh.f32 %v1740_v23  ;;  %v1744_v29 = vadd.f32 %v1743_v10, %v771_v18  ;;  %v1745_v12 = vpop.f32.mrb[39].mxu1  ;;  %v1633_v31 = vadd.f32 %v1632_v11, %v771_v18 }
 0x2f2   : > { %v2869_v30 = vpop.eup %2868  ;;  %2888 = vtanh.f32 %v1629_v24  ;;  %v1746_v33 = vadd.f32 %v1745_v12, %v771_v18 }
 0x2f3   : > { %v2871_v32 = vpop.eup %2870  ;;  %2890 = vtanh.f32 %v1742_v27 }
 0x2f4   : > { %v2873_v34 = vpop.eup %2872  ;;  %2892 = vtanh.f32 %v1631_v28 }
 0x2f5   : > { %v2875_v36 = vpop.eup %2874  ;;  %2894 = vtanh.f32 %v1744_v29  ;;  %v1636_v38 = vpop.f32.mrb[40].mxu0 }
 0x2f6   : > { %v2877_v39 = vpop.eup %2876  ;;  %2896 = vtanh.f32 %v1633_v31  ;;  %v1637_v40 = vadd.f32 %v1636_v38, %v776_v37  ;;  %v1749_v41 = vpop.f32.mrb[40].mxu1 }
 0x2f7   : > { %v1638_v42 = vpop.f32.mrb[41].mxu0  ;;  %v2879_v43 = vpop.eup %2878  ;;  %2898 = vtanh.f32 %v1746_v33  ;;  %v1750_v44 = vadd.f32 %v1749_v41, %v776_v37  ;;  %v1872_v48 = vpack.c.bf16 %v2877_v39, %v2869_v30 }
 0x2f8   : > { %v1639_v45 = vadd.f32 %v1638_v42, %v776_v37  ;;  %v1751_v46 = vpop.f32.mrb[41].mxu1  ;;  %v1640_v47 = vpop.f32.mrb[42].mxu0  ;;  %2900 = vtanh.f32 %v1637_v40  ;;  %v1874_v54 = vpack.c.bf16 %v2879_v43, %v2871_v32 }
 0x2f9   : > { %v2881_v49 = vpop.eup %2880  ;;  %v1752_v50 = vadd.f32 %v1751_v46, %v776_v37  ;;  %v1641_v51 = vadd.f32 %v1640_v47, %v781_v35  ;;  %v1753_v52 = vpop.f32.mrb[42].mxu1  ;;  %2902 = vtanh.f32 %v1750_v44 }
 0x2fa   : > { %v1642_v53 = vpop.f32.mrb[43].mxu0  ;;  %v2883_v55 = vpop.eup %2882  ;;  %v1754_v56 = vadd.f32 %v1753_v52, %v781_v35  ;;  %v1873_v58 = vpack.c.bf16 %v2881_v49, %v2873_v34  ;;  %2904 = vtanh.f32 %v1639_v45 }
 0x2fb   : > { %v1755_v57 = vpop.f32.mrb[43].mxu1  ;;  %v2885_v59 = vpop.eup %2884  ;;  %v1643_v60 = vadd.f32 %v1642_v53, %v781_v35  ;;  %v1875_v61 = vpack.c.bf16 %v2883_v55, %v2875_v36  ;;  %2906 = vtanh.f32 %v1752_v50 }
 0x2fc   : > { %v2887_v63 = vpop.eup %2886  ;;  %v1756_v0 = vadd.f32 %v1755_v57, %v781_v35  ;;  %1952 = vmatprep.subr.bf16.mxu0 %v1873_v58  ;;  %2908 = vtanh.f32 %v1641_v51  ;;  %v801_v33 = vpop.permute.xlu1 %800 }
 0x2fd   : > { %v2889_v1 = vpop.eup %2888  ;;  %2065 = vmatprep.subr.bf16.mxu1 %v1875_v61  ;;  %1953 = vmatpush1.bf16.msra.mxu0 %v1872_v48  ;;  %2910 = vtanh.f32 %v1754_v56  ;;  %v1646_v6 = vpop.f32.mrb[44].mxu0 }
 0x2fe   : > { %v2891_v4 = vpop.eup %2890  ;;  %2066 = vmatpush1.bf16.msra.mxu1 %v1874_v54  ;;  %2912 = vtanh.f32 %v1643_v60  ;;  %v1647_v8 = vadd.f32 %v1646_v6, %v786_v5  ;;  %v1759_v13 = vpop.f32.mrb[44].mxu1 }
 0x2ff   : > { %v2893_v7 = vpop.eup %2892  ;;  %v1648_v14 = vpop.f32.mrb[45].mxu0  ;;  %2914 = vtanh.f32 %v1756_v0  ;;  %v1760_v16 = vadd.f32 %v1759_v13, %v786_v5 }
 0x300   : > { %v2895_v15 = vpop.eup %2894  ;;  %v1649_v17 = vadd.f32 %v1648_v14, %v786_v5  ;;  %v1761_v18 = vpop.f32.mrb[45].mxu1  ;;  %v1876_v20 = vpack.c.bf16 %v2893_v7, %v2885_v59  ;;  %2916 = vtanh.f32 %v1647_v8 }
 0x301   : > { %v1650_v19 = vpop.f32.mrb[46].mxu0  ;;  %v2897_v21 = vpop.eup %2896  ;;  %v1762_v9 = vadd.f32 %v1761_v18, %v786_v5  ;;  %v1878_v25 = vpack.c.bf16 %v2895_v15, %v2887_v63  ;;  %2918 = vtanh.f32 %v1760_v16 }
 0x302   : > { %v1651_v22 = vadd.f32 %v1650_v19, %v791_v3  ;;  %v1763_v23 = vpop.f32.mrb[46].mxu1  ;;  %v1652_v24 = vpop.f32.mrb[47].mxu0  ;;  %v1877_v10 = vpack.c.bf16 %v2897_v21, %v2889_v1  ;;  %2920 = vtanh.f32 %v1649_v17 }
 0x303   : > { %v2899_v26 = vpop.eup %2898  ;;  %v1764_v27 = vadd.f32 %v1763_v23, %v791_v3  ;;  %v1765_v28 = vpop.f32.mrb[47].mxu1  ;;  %v1653_v29 = vadd.f32 %v1652_v24, %v791_v3  ;;  %2922 = vtanh.f32 %v1762_v9 }
 0x304   : > { %v2901_v11 = vpop.eup %2900  ;;  %v1879_v12 = vpack.c.bf16 %v2899_v26, %v2891_v4  ;;  %v1766_v31 = vadd.f32 %v1765_v28, %v791_v3  ;;  %1954 = vmatprep.subr.bf16.mxu0 %v1877_v10  ;;  %2924 = vtanh.f32 %v1651_v22  ;;  %v796_v35 = vpop.permute.xlu0 %795 }
 0x305   : > { %v2903_v30 = vpop.eup %2902  ;;  %1955 = vmatpush1.bf16.msra.mxu0 %v1876_v20  ;;  %2926 = vtanh.f32 %v1764_v27  ;;  %v1656_v36 = vpop.f32.mrb[48].mxu0 }
 0x306   : > { %v2905_v32 = vpop.eup %2904  ;;  %2067 = vmatprep.subr.bf16.mxu1 %v1879_v12  ;;  %2928 = vtanh.f32 %v1653_v29  ;;  %v1657_v38 = vadd.f32 %v1656_v36, %v796_v35  ;;  %v1769_v39 = vpop.f32.mrb[48].mxu1 }
 0x307   : > { %v2907_v34 = vpop.eup %2906  ;;  %2068 = vmatpush1.bf16.msra.mxu1 %v1878_v25  ;;  %v1658_v40 = vpop.f32.mrb[49].mxu0  ;;  %2930 = vtanh.f32 %v1766_v31  ;;  %v1770_v42 = vadd.f32 %v1769_v39, %v796_v35 }
 0x308   : > { %v2909_v37 = vpop.eup %2908  ;;  %v1659_v43 = vadd.f32 %v1658_v40, %v796_v35  ;;  %v1771_v44 = vpop.f32.mrb[49].mxu1  ;;  %2932 = vtanh.f32 %v1657_v38 }
 0x309   : > { %v2911_v41 = vpop.eup %2910  ;;  %v1660_v45 = vpop.f32.mrb[50].mxu0  ;;  %v1880_v46 = vpack.c.bf16 %v2909_v37, %v2901_v11  ;;  %v1772_v48 = vadd.f32 %v1771_v44, %v796_v35  ;;  %2934 = vtanh.f32 %v1770_v42 }
 0x30a   : > { %v2913_v47 = vpop.eup %2912  ;;  %v1661_v49 = vadd.f32 %v1660_v45, %v801_v33  ;;  %v1773_v50 = vpop.f32.mrb[50].mxu1  ;;  %v1882_v52 = vpack.c.bf16 %v2911_v41, %v2903_v30  ;;  %2936 = vtanh.f32 %v1659_v43 }
 0x30b   : > { %v1662_v51 = vpop.f32.mrb[51].mxu0  ;;  %v2915_v53 = vpop.eup %2914  ;;  %v1774_v54 = vadd.f32 %v1773_v50, %v801_v33  ;;  %v1881_v56 = vpack.c.bf16 %v2913_v47, %v2905_v32  ;;  %2938 = vtanh.f32 %v1772_v48 }
 0x30c   : > { %v1775_v55 = vpop.f32.mrb[51].mxu1  ;;  %v2917_v57 = vpop.eup %2916  ;;  %v1663_v58 = vadd.f32 %v1662_v51, %v801_v33  ;;  %v1883_v59 = vpack.c.bf16 %v2915_v53, %v2907_v34  ;;  %2940 = vtanh.f32 %v1661_v49 }
 0x30d   : > { %v2919_v60 = vpop.eup %2918  ;;  %v1776_v61 = vadd.f32 %v1775_v55, %v801_v33  ;;  %1956 = vmatprep.subr.bf16.mxu0 %v1881_v56  ;;  %v811_v0 = vpop.permute.xlu1 %810  ;;  %2942 = vtanh.f32 %v1774_v54 }
 0x30e   : > { %v2921_v63 = vpop.eup %2920  ;;  %2069 = vmatprep.subr.bf16.mxu1 %v1883_v59  ;;  %1957 = vmatpush1.bf16.msra.mxu0 %v1880_v46  ;;  %v806_v3 = vpop.permute.xlu0 %805  ;;  %2944 = vtanh.f32 %v1663_v58 }
 0x30f   : > { %v2923_v1 = vpop.eup %2922  ;;  %2070 = vmatpush1.bf16.msra.mxu1 %v1882_v52  ;;  %v1666_v4 = vpop.f32.mrb[52].mxu0  ;;  %2946 = vtanh.f32 %v1776_v61 }
 0x310   : > { %v2925_v5 = vpop.eup %2924  ;;  %v1667_v6 = vadd.f32 %v1666_v4, %v806_v3  ;;  %v1779_v7 = vpop.f32.mrb[52].mxu1 }
 0x311   : > { %v1668_v8 = vpop.f32.mrb[53].mxu0  ;;  %v2927_v13 = vpop.eup %2926  ;;  %v1780_v14 = vadd.f32 %v1779_v7, %v806_v3  ;;  %v1884_v18 = vpack.c.bf16 %v2925_v5, %v2917_v57 }
 0x312   : > { %v1669_v15 = vadd.f32 %v1668_v8, %v806_v3  ;;  %v1781_v16 = vpop.f32.mrb[53].mxu1  ;;  %v1670_v17 = vpop.f32.mrb[54].mxu0  ;;  %2948 = vtanh.f32 %v1667_v6  ;;  %v1886_v23 = vpack.c.bf16 %v2927_v13, %v2919_v60 }
 0x313   : > { %v2929_v19 = vpop.eup %2928  ;;  %v1782_v20 = vadd.f32 %v1781_v16, %v806_v3  ;;  %v1671_v21 = vadd.f32 %v1670_v17, %v811_v0  ;;  %v1783_v9 = vpop.f32.mrb[54].mxu1  ;;  %2950 = vtanh.f32 %v1780_v14 }
 0x314   : > { %v1672_v22 = vpop.f32.mrb[55].mxu0  ;;  %v2931_v24 = vpop.eup %2930  ;;  %v1784_v25 = vadd.f32 %v1783_v9, %v811_v0  ;;  %v1885_v27 = vpack.c.bf16 %v2929_v19, %v2921_v63  ;;  %2952 = vtanh.f32 %v1669_v15 }
 0x315   : > { %v1785_v26 = vpop.f32.mrb[55].mxu1  ;;  %v2933_v28 = vpop.eup %2932  ;;  %v1673_v10 = vadd.f32 %v1672_v22, %v811_v0  ;;  %v1887_v11 = vpack.c.bf16 %v2931_v24, %v2923_v1  ;;  %2954 = vtanh.f32 %v1782_v20 }
 0x316   : > { %v2935_v29 = vpop.eup %2934  ;;  %v1786_v12 = vadd.f32 %v1785_v26, %v811_v0  ;;  %1958 = vmatprep.subr.bf16.mxu0 %v1885_v27  ;;  %v821_v31 = vpop.permute.xlu1 %820  ;;  %2956 = vtanh.f32 %v1671_v21 }
 0x317   : > { %v2937_v30 = vpop.eup %2936  ;;  %2071 = vmatprep.subr.bf16.mxu1 %v1887_v11  ;;  %1959 = vmatpush1.bf16.msra.mxu0 %v1884_v18  ;;  %v816_v33 = vpop.permute.xlu0 %815  ;;  %2958 = vtanh.f32 %v1784_v25 }
 0x318   : > { %v2939_v32 = vpop.eup %2938  ;;  %2072 = vmatpush1.bf16.msra.mxu1 %v1886_v23  ;;  %v1676_v34 = vpop.f32.mrb[56].mxu0  ;;  %2960 = vtanh.f32 %v1673_v10 }
 0x319   : > { %v2941_v35 = vpop.eup %2940  ;;  %v1677_v36 = vadd.f32 %v1676_v34, %v816_v33  ;;  %v1789_v37 = vpop.f32.mrb[56].mxu1  ;;  %2962 = vtanh.f32 %v1786_v12 }
 0x31a   : > { %v1678_v38 = vpop.f32.mrb[57].mxu0  ;;  %v2943_v39 = vpop.eup %2942  ;;  %v1790_v40 = vadd.f32 %v1789_v37, %v816_v33  ;;  %v1888_v44 = vpack.c.bf16 %v2941_v35, %v2933_v28 }
 0x31b   : > { %v1679_v41 = vadd.f32 %v1678_v38, %v816_v33  ;;  %v1791_v42 = vpop.f32.mrb[57].mxu1  ;;  %v1680_v43 = vpop.f32.mrb[58].mxu0  ;;  %2964 = vtanh.f32 %v1677_v36  ;;  %v1890_v50 = vpack.c.bf16 %v2943_v39, %v2935_v29 }
 0x31c   : > { %v2945_v45 = vpop.eup %2944  ;;  %v1792_v46 = vadd.f32 %v1791_v42, %v816_v33  ;;  %v1681_v47 = vadd.f32 %v1680_v43, %v821_v31  ;;  %v1793_v48 = vpop.f32.mrb[58].mxu1  ;;  %2966 = vtanh.f32 %v1790_v40 }
 0x31d   : > { %v1682_v49 = vpop.f32.mrb[59].mxu0  ;;  %v2947_v51 = vpop.eup %2946  ;;  %v1794_v52 = vadd.f32 %v1793_v48, %v821_v31  ;;  %v1889_v54 = vpack.c.bf16 %v2945_v45, %v2937_v30  ;;  %2968 = vtanh.f32 %v1679_v41 }
 0x31e   : > { %v1795_v53 = vpop.f32.mrb[59].mxu1  ;;  %v2949_v55 = vpop.eup %2948  ;;  %v1683_v56 = vadd.f32 %v1682_v49, %v821_v31  ;;  %v1891_v57 = vpack.c.bf16 %v2947_v51, %v2939_v32  ;;  %2970 = vtanh.f32 %v1792_v46  ;;  %v2605_v51 = vld [vmem:[%s3850_s7 + $0x8] sm:$0xff]  }
 0x31f   : > { %v2951_v58 = vpop.eup %2950  ;;  %v1796_v59 = vadd.f32 %v1795_v53, %v821_v31  ;;  %1960 = vmatprep.subr.bf16.mxu0 %v1889_v54  ;;  %v831_v61 = vpop.permute.xlu1 %830  ;;  %2972 = vtanh.f32 %v1681_v47  ;;  %v2607_v53 = vld [vmem:[%s3850_s7 + $0x18] sm:$0xff]   ;;  %v2608_v54 = vld [vmem:[%s3850_s7 + $0x20] sm:$0xff]  }
 0x320   : > { %v2953_v60 = vpop.eup %2952  ;;  %2073 = vmatprep.subr.bf16.mxu1 %v1891_v57  ;;  %1961 = vmatpush1.bf16.msra.mxu0 %v1888_v44  ;;  %v826_v0 = vpop.permute.xlu0 %825  ;;  %2974 = vtanh.f32 %v1794_v52  ;;  %v2606_v52 = vld [vmem:[%s3850_s7 + $0x10] sm:$0xff]   ;;  %v2611_v57 = vld [vmem:[%s3850_s7 + $0x38] sm:$0xff]  }
 0x321   : > { %v2955_v63 = vpop.eup %2954  ;;  %2074 = vmatpush1.bf16.msra.mxu1 %v1890_v50  ;;  %v1686_v1 = vpop.f32.mrb[60].mxu0  ;;  %2976 = vtanh.f32 %v1683_v56  ;;  %v2604_v50 = vld [vmem:[%s3850_s7] sm:$0xff]   ;;  %v2610_v56 = vld [vmem:[%s3850_s7 + $0x30] sm:$0xff]  }
 0x322   : > { %v2957_v3 = vpop.eup %2956  ;;  %v1687_v4 = vadd.f32 %v1686_v1, %v826_v0  ;;  %v1799_v5 = vpop.f32.mrb[60].mxu1  ;;  %2978 = vtanh.f32 %v1796_v59 }
 0x323   : > { %v1688_v6 = vpop.f32.mrb[61].mxu0  ;;  %v2959_v7 = vpop.eup %2958  ;;  %v1800_v8 = vadd.f32 %v1799_v5, %v826_v0  ;;  %v1892_v16 = vpack.c.bf16 %v2957_v3, %v2949_v55  ;;  %v2609_v55 = vld [vmem:[%s3850_s7 + $0x28] sm:$0xff]  }
 0x324   : > { %v1689_v13 = vadd.f32 %v1688_v6, %v826_v0  ;;  %v1801_v14 = vpop.f32.mrb[61].mxu1  ;;  %v1690_v15 = vpop.f32.mrb[62].mxu0  ;;  %2980 = vtanh.f32 %v1687_v4  ;;  %v1894_v9 = vpack.c.bf16 %v2959_v7, %v2951_v58 }
 0x325   : > { %v2961_v17 = vpop.eup %2960  ;;  %v1802_v18 = vadd.f32 %v1801_v14, %v826_v0  ;;  %v1691_v19 = vadd.f32 %v1690_v15, %v831_v61  ;;  %v1803_v20 = vpop.f32.mrb[62].mxu1  ;;  %2982 = vtanh.f32 %v1800_v8 }
 0x326   : > { %v1692_v21 = vpop.f32.mrb[63].mxu0  ;;  %v2963_v22 = vpop.eup %2962  ;;  %v1804_v23 = vadd.f32 %v1803_v20, %v831_v61  ;;  %v1893_v25 = vpack.c.bf16 %v2961_v17, %v2953_v60  ;;  %2984 = vtanh.f32 %v1689_v13 }
 0x327   : > { %v1805_v24 = vpop.f32.mrb[63].mxu1  ;;  %v2965_v26 = vpop.eup %2964  ;;  %v1693_v27 = vadd.f32 %v1692_v21, %v831_v61  ;;  %v1895_v28 = vpack.c.bf16 %v2963_v22, %v2955_v63  ;;  %2986 = vtanh.f32 %v1802_v18 }
 0x328   : > { %v2967_v10 = vpop.eup %2966  ;;  %v1806_v11 = vadd.f32 %v1805_v24, %v831_v61  ;;  %1962 = vmatprep.subr.bf16.mxu0 %v1893_v25  ;;  %2988 = vtanh.f32 %v1691_v19  ;;  %v841_v58 = vpop.permute.xlu1 %840 }
 0x329   : > { %v2969_v29 = vpop.eup %2968  ;;  %2075 = vmatprep.subr.bf16.mxu1 %v1895_v28  ;;  %1963 = vmatpush1.bf16.msra.mxu0 %v1892_v16  ;;  %2990 = vtanh.f32 %v1804_v23  ;;  %v836_v59 = vpop.permute.xlu0 %835 }
 0x32a   : > { %v2971_v12 = vpop.eup %2970  ;;  %2076 = vmatpush1.bf16.msra.mxu1 %v1894_v9  ;;  %2992 = vtanh.f32 %v1693_v27 }
 0x32b   : > { %v2973_v30 = vpop.eup %2972  ;;  %2994 = vtanh.f32 %v1806_v11 }
 0x32c   : > { %v2975_v31 = vpop.eup %2974  ;;  %v1896_v32 = vpack.c.bf16 %v2973_v30, %v2965_v26  ;;  %v851_v17 = vpop.permute.xlu1 %850 }
 0x32d   : > { %v2977_v33 = vpop.eup %2976  ;;  %v1898_v34 = vpack.c.bf16 %v2975_v31, %v2967_v10  ;;  %v846_v18 = vpop.permute.xlu0 %845 }
 0x32e   : > { %v2979_v35 = vpop.eup %2978  ;;  %v1897_v36 = vpack.c.bf16 %v2977_v33, %v2969_v29 }
 0x32f   : > { %v2981_v37 = vpop.eup %2980  ;;  %v1899_v38 = vpack.c.bf16 %v2979_v35, %v2971_v12 }
 0x330   : > { %v2983_v39 = vpop.eup %2982  ;;  %1964 = vmatprep.subr.bf16.mxu0 %v1897_v36 }
 0x331   : > { %v2985_v40 = vpop.eup %2984  ;;  %2077 = vmatprep.subr.bf16.mxu1 %v1899_v38  ;;  %1965 = vmatpush1.bf16.msra.mxu0 %v1896_v32  ;;  %v856_v36 = vpop.permute.xlu0 %855 }
 0x332   : > { %v2987_v41 = vpop.eup %2986  ;;  %2078 = vmatpush1.bf16.msra.mxu1 %v1898_v34  ;;  %v861_v34 = vpop.permute.xlu1 %860 }
 0x333   : > { %v2989_v42 = vpop.eup %2988 }
 0x334   : > { %v2991_v43 = vpop.eup %2990  ;;  %v1900_v44 = vpack.c.bf16 %v2989_v42, %v2981_v37 }
 0x335   : > { %v2993_v45 = vpop.eup %2992  ;;  %v1902_v46 = vpack.c.bf16 %v2991_v43, %v2983_v39 }
 0x336   : > { %v2995_v47 = vpop.eup %2994  ;;  %v1901_v48 = vpack.c.bf16 %v2993_v45, %v2985_v40 }
 0x337   : > { %v1903_v49 = vpack.c.bf16 %v2995_v47, %v2987_v41 }
 0x338   : > { %1966 = vmatprep.subr.bf16.mxu0 %v1901_v48 }
 0x339   : > { %2079 = vmatprep.subr.bf16.mxu1 %v1903_v49  ;;  %1967 = vmatpush1.bf16.msra.mxu0 %v1900_v44 }
 0x33a   : > { %2080 = vmatpush1.bf16.msra.mxu1 %v1902_v46 }
 0x33c   : > { %1985 = vmatmul.mubr.bf16.vlgmr.msra.gmra.mrb[64].mxu0 %v2604_v50 }
 0x33d   : > { %2098 = vmatmul.mubr.bf16.vlgmr.msra.gmra.mrb[64].mxu1 %v2604_v50  ;;  %1994 = vmatprep.mubr.bf16.mxu0 %v3204_v2 }
 0x33e   : > { %2107 = vmatprep.mubr.bf16.mxu1 %v3204_v2 }
 0x344   : > { %1995 = vmatmul.mubr.bf16.gmra.mrb[68].mxu0 %v2605_v51 }
 0x345   : > { %2108 = vmatmul.mubr.bf16.gmra.mrb[68].mxu1 %v2605_v51  ;;  %2004 = vmatprep.mubr.bf16.mxu0 %v3204_v2 }
 0x346   : > { %2117 = vmatprep.mubr.bf16.mxu1 %v3204_v2 }
 0x34c   : > { %2005 = vmatmul.mubr.bf16.gmra.mrb[72].mxu0 %v2606_v52 }
 0x34d   : > { %2118 = vmatmul.mubr.bf16.gmra.mrb[72].mxu1 %v2606_v52  ;;  %2014 = vmatprep.mubr.bf16.mxu0 %v3204_v2 }
 0x34e   : > { %2127 = vmatprep.mubr.bf16.mxu1 %v3204_v2 }
 0x354   : > { %2015 = vmatmul.mubr.bf16.gmra.mrb[76].mxu0 %v2607_v53 }
 0x355   : > { %2128 = vmatmul.mubr.bf16.gmra.mrb[76].mxu1 %v2607_v53  ;;  %2024 = vmatprep.mubr.bf16.mxu0 %v3204_v2 }
 0x356   : > { %2137 = vmatprep.mubr.bf16.mxu1 %v3204_v2 }
 0x35c   : > { %2025 = vmatmul.mubr.bf16.gmra.mrb[80].mxu0 %v2608_v54 }
 0x35d   : > { %2138 = vmatmul.mubr.bf16.gmra.mrb[80].mxu1 %v2608_v54  ;;  %2034 = vmatprep.mubr.bf16.mxu0 %v3204_v2 }
 0x35e   : > { %2147 = vmatprep.mubr.bf16.mxu1 %v3204_v2 }
 0x364   : > { %2035 = vmatmul.mubr.bf16.gmra.mrb[84].mxu0 %v2609_v55 }
 0x365   : > { %2148 = vmatmul.mubr.bf16.gmra.mrb[84].mxu1 %v2609_v55  ;;  %2044 = vmatprep.mubr.bf16.mxu0 %v3204_v2 }
 0x366   : > { %2157 = vmatprep.mubr.bf16.mxu1 %v3204_v2 }
 0x36c   : > { %2045 = vmatmul.mubr.bf16.gmra.mrb[88].mxu0 %v2610_v56 }
 0x36d   : > { %2158 = vmatmul.mubr.bf16.gmra.mrb[88].mxu1 %v2610_v56  ;;  %2054 = vmatprep.mubr.bf16.mxu0 %v3204_v2 }
 0x36e   : > { %2167 = vmatprep.mubr.bf16.mxu1 %v3204_v2 }
 0x374   : > { %2055 = vmatmul.mubr.bf16.gmra.mrb[92].mxu0 %v2611_v57 }
 0x375   : > { %2168 = vmatmul.mubr.bf16.gmra.mrb[92].mxu1 %v2611_v57  ;;  %2306 = vmatprep.mubr.bf16.mxu0 %v3204_v2 }
 0x376   : > { %2347 = vmatprep.mubr.bf16.mxu1 %v3204_v2 }
 0x40f   : > { %v1986_v60 = vpop.f32.mrb[64].mxu0 }
 0x410   : > { %v1987_v61 = vadd.f32 %v1986_v60, %v836_v59  ;;  %v2099_v63 = vpop.f32.mrb[64].mxu1  ;;  %v1988_v0 = vpop.f32.mrb[65].mxu0 }
 0x411   : > { %v2100_v1 = vadd.f32 %v2099_v63, %v836_v59  ;;  %v1989_v3 = vadd.f32 %v1988_v0, %v836_v59  ;;  %v2101_v4 = vpop.f32.mrb[65].mxu1  ;;  %v1990_v5 = vpop.f32.mrb[66].mxu0 }
 0x412   : > { %2996 = vtanh.f32 %v1987_v61  ;;  %v2102_v6 = vadd.f32 %v2101_v4, %v836_v59  ;;  %v1991_v7 = vadd.f32 %v1990_v5, %v841_v58  ;;  %v2103_v8 = vpop.f32.mrb[66].mxu1  ;;  %v1992_v13 = vpop.f32.mrb[67].mxu0 }
 0x413   : > { %2998 = vtanh.f32 %v2100_v1  ;;  %v2104_v14 = vadd.f32 %v2103_v8, %v841_v58  ;;  %v2105_v15 = vpop.f32.mrb[67].mxu1  ;;  %v1993_v2 = vadd.f32 %v1992_v13, %v841_v58  ;;  %v871_v1 = vpop.permute.xlu1 %870 }
 0x414   : > { %3000 = vtanh.f32 %v1989_v3  ;;  %v2106_v16 = vadd.f32 %v2105_v15, %v841_v58  ;;  %v866_v4 = vpop.permute.xlu0 %865 }
 0x415   : > { %3002 = vtanh.f32 %v2102_v6 }
 0x416   : > { %3004 = vtanh.f32 %v1991_v7 }
 0x417   : > { %3006 = vtanh.f32 %v2104_v14  ;;  %v1996_v19 = vpop.f32.mrb[68].mxu0 }
 0x418   : > { %3008 = vtanh.f32 %v1993_v2  ;;  %v1997_v20 = vadd.f32 %v1996_v19, %v846_v18  ;;  %v2109_v21 = vpop.f32.mrb[68].mxu1  ;;  %v1998_v9 = vpop.f32.mrb[69].mxu0 }
 0x419   : > { %3010 = vtanh.f32 %v2106_v16  ;;  %v2110_v22 = vadd.f32 %v2109_v21, %v846_v18  ;;  %v1999_v23 = vadd.f32 %v1998_v9, %v846_v18  ;;  %v2111_v24 = vpop.f32.mrb[69].mxu1  ;;  %v2000_v25 = vpop.f32.mrb[70].mxu0 }
 0x41a   : > { %3012 = vtanh.f32 %v1997_v20  ;;  %v2112_v26 = vadd.f32 %v2111_v24, %v846_v18  ;;  %v2001_v27 = vadd.f32 %v2000_v25, %v851_v17  ;;  %v2113_v28 = vpop.f32.mrb[70].mxu1  ;;  %v2002_v10 = vpop.f32.mrb[71].mxu0 }
 0x41b   : > { %3014 = vtanh.f32 %v2110_v22  ;;  %v2114_v11 = vadd.f32 %v2113_v28, %v851_v17  ;;  %v2115_v29 = vpop.f32.mrb[71].mxu1  ;;  %v2003_v30 = vadd.f32 %v2002_v10, %v851_v17 }
 0x41c   : > { %v2997_v12 = vpop.eup %2996  ;;  %3016 = vtanh.f32 %v1999_v23  ;;  %v2116_v32 = vadd.f32 %v2115_v29, %v851_v17 }
 0x41d   : > { %v2999_v31 = vpop.eup %2998  ;;  %3018 = vtanh.f32 %v2112_v26 }
 0x41e   : > { %v3001_v33 = vpop.eup %3000  ;;  %3020 = vtanh.f32 %v2001_v27 }
 0x41f   : > { %v3003_v35 = vpop.eup %3002  ;;  %3022 = vtanh.f32 %v2114_v11  ;;  %v2006_v37 = vpop.f32.mrb[72].mxu0 }
 0x420   : > { %v3005_v38 = vpop.eup %3004  ;;  %3024 = vtanh.f32 %v2003_v30  ;;  %v2007_v39 = vadd.f32 %v2006_v37, %v856_v36  ;;  %v2119_v40 = vpop.f32.mrb[72].mxu1 }
 0x421   : > { %v2008_v41 = vpop.f32.mrb[73].mxu0  ;;  %v3007_v42 = vpop.eup %3006  ;;  %3026 = vtanh.f32 %v2116_v32  ;;  %v2120_v43 = vadd.f32 %v2119_v40, %v856_v36  ;;  %v2242_v47 = vpack.c.bf16 %v3005_v38, %v2997_v12 }
 0x422   : > { %v2009_v44 = vadd.f32 %v2008_v41, %v856_v36  ;;  %v2121_v45 = vpop.f32.mrb[73].mxu1  ;;  %v2010_v46 = vpop.f32.mrb[74].mxu0  ;;  %3028 = vtanh.f32 %v2007_v39  ;;  %v2244_v53 = vpack.c.bf16 %v3007_v42, %v2999_v31 }
 0x423   : > { %v3009_v48 = vpop.eup %3008  ;;  %v2122_v49 = vadd.f32 %v2121_v45, %v856_v36  ;;  %v2011_v50 = vadd.f32 %v2010_v46, %v861_v34  ;;  %v2123_v51 = vpop.f32.mrb[74].mxu1  ;;  %3030 = vtanh.f32 %v2120_v43 }
 0x424   : > { %v2012_v52 = vpop.f32.mrb[75].mxu0  ;;  %v3011_v54 = vpop.eup %3010  ;;  %v2124_v55 = vadd.f32 %v2123_v51, %v861_v34  ;;  %v2243_v57 = vpack.c.bf16 %v3009_v48, %v3001_v33  ;;  %3032 = vtanh.f32 %v2009_v44 }
 0x425   : > { %v2125_v56 = vpop.f32.mrb[75].mxu1  ;;  %v3013_v58 = vpop.eup %3012  ;;  %v2013_v59 = vadd.f32 %v2012_v52, %v861_v34  ;;  %v2245_v60 = vpack.c.bf16 %v3011_v54, %v3003_v35  ;;  %3034 = vtanh.f32 %v2122_v49 }
 0x426   : > { %v3015_v61 = vpop.eup %3014  ;;  %v2126_v63 = vadd.f32 %v2125_v56, %v861_v34  ;;  %2274 = vmatprep.subr.bf16.mxu0 %v2243_v57  ;;  %3036 = vtanh.f32 %v2011_v50  ;;  %v881_v31 = vpop.permute.xlu1 %880 }
 0x427   : > { %v3017_v0 = vpop.eup %3016  ;;  %2315 = vmatprep.subr.bf16.mxu1 %v2245_v60  ;;  %2275 = vmatpush1.bf16.msra.mxu0 %v2242_v47  ;;  %3038 = vtanh.f32 %v2124_v55  ;;  %v2016_v5 = vpop.f32.mrb[76].mxu0 }
 0x428   : > { %v3019_v3 = vpop.eup %3018  ;;  %2316 = vmatpush1.bf16.msra.mxu1 %v2244_v53  ;;  %3040 = vtanh.f32 %v2013_v59  ;;  %v2017_v7 = vadd.f32 %v2016_v5, %v866_v4  ;;  %v2129_v8 = vpop.f32.mrb[76].mxu1 }
 0x429   : > { %v3021_v6 = vpop.eup %3020  ;;  %v2018_v13 = vpop.f32.mrb[77].mxu0  ;;  %3042 = vtanh.f32 %v2126_v63  ;;  %v2130_v15 = vadd.f32 %v2129_v8, %v866_v4 }
 0x42a   : > { %v3023_v14 = vpop.eup %3022  ;;  %v2019_v2 = vadd.f32 %v2018_v13, %v866_v4  ;;  %v2131_v16 = vpop.f32.mrb[77].mxu1  ;;  %v2246_v18 = vpack.c.bf16 %v3021_v6, %v3013_v58  ;;  %3044 = vtanh.f32 %v2017_v7 }
 0x42b   : > { %v2020_v17 = vpop.f32.mrb[78].mxu0  ;;  %v3025_v19 = vpop.eup %3024  ;;  %v2132_v20 = vadd.f32 %v2131_v16, %v866_v4  ;;  %v2248_v23 = vpack.c.bf16 %v3023_v14, %v3015_v61  ;;  %3046 = vtanh.f32 %v2130_v15 }
 0x42c   : > { %v2021_v21 = vadd.f32 %v2020_v17, %v871_v1  ;;  %v2133_v9 = vpop.f32.mrb[78].mxu1  ;;  %v2022_v22 = vpop.f32.mrb[79].mxu0  ;;  %v2247_v27 = vpack.c.bf16 %v3025_v19, %v3017_v0  ;;  %3048 = vtanh.f32 %v2019_v2 }
 0x42d   : > { %v3027_v24 = vpop.eup %3026  ;;  %v2134_v25 = vadd.f32 %v2133_v9, %v871_v1  ;;  %v2135_v26 = vpop.f32.mrb[79].mxu1  ;;  %v2023_v10 = vadd.f32 %v2022_v22, %v871_v1  ;;  %3050 = vtanh.f32 %v2132_v20 }
 0x42e   : > { %v3029_v28 = vpop.eup %3028  ;;  %v2249_v11 = vpack.c.bf16 %v3027_v24, %v3019_v3  ;;  %v2136_v12 = vadd.f32 %v2135_v26, %v871_v1  ;;  %2276 = vmatprep.subr.bf16.mxu0 %v2247_v27  ;;  %3052 = vtanh.f32 %v2021_v21  ;;  %v876_v33 = vpop.permute.xlu0 %875 }
 0x42f   : > { %v3031_v29 = vpop.eup %3030  ;;  %2277 = vmatpush1.bf16.msra.mxu0 %v2246_v18  ;;  %3054 = vtanh.f32 %v2134_v25  ;;  %v2026_v34 = vpop.f32.mrb[80].mxu0 }
 0x430   : > { %v3033_v30 = vpop.eup %3032  ;;  %2317 = vmatprep.subr.bf16.mxu1 %v2249_v11  ;;  %3056 = vtanh.f32 %v2023_v10  ;;  %v2027_v36 = vadd.f32 %v2026_v34, %v876_v33  ;;  %v2139_v37 = vpop.f32.mrb[80].mxu1 }
 0x431   : > { %v3035_v32 = vpop.eup %3034  ;;  %2318 = vmatpush1.bf16.msra.mxu1 %v2248_v23  ;;  %v2028_v38 = vpop.f32.mrb[81].mxu0  ;;  %3058 = vtanh.f32 %v2136_v12  ;;  %v2140_v40 = vadd.f32 %v2139_v37, %v876_v33 }
 0x432   : > { %v3037_v35 = vpop.eup %3036  ;;  %v2029_v41 = vadd.f32 %v2028_v38, %v876_v33  ;;  %v2141_v42 = vpop.f32.mrb[81].mxu1  ;;  %3060 = vtanh.f32 %v2027_v36 }
 0x433   : > { %v3039_v39 = vpop.eup %3038  ;;  %v2030_v43 = vpop.f32.mrb[82].mxu0  ;;  %v2250_v44 = vpack.c.bf16 %v3037_v35, %v3029_v28  ;;  %v2142_v46 = vadd.f32 %v2141_v42, %v876_v33  ;;  %3062 = vtanh.f32 %v2140_v40 }
 0x434   : > { %v3041_v45 = vpop.eup %3040  ;;  %v2031_v47 = vadd.f32 %v2030_v43, %v881_v31  ;;  %v2143_v48 = vpop.f32.mrb[82].mxu1  ;;  %v2252_v50 = vpack.c.bf16 %v3039_v39, %v3031_v29  ;;  %3064 = vtanh.f32 %v2029_v41 }
 0x435   : > { %v2032_v49 = vpop.f32.mrb[83].mxu0  ;;  %v3043_v51 = vpop.eup %3042  ;;  %v2144_v52 = vadd.f32 %v2143_v48, %v881_v31  ;;  %v2251_v54 = vpack.c.bf16 %v3041_v45, %v3033_v30  ;;  %3066 = vtanh.f32 %v2142_v46 }
 0x436   : > { %v2145_v53 = vpop.f32.mrb[83].mxu1  ;;  %v3045_v55 = vpop.eup %3044  ;;  %v2033_v56 = vadd.f32 %v2032_v49, %v881_v31  ;;  %v2253_v57 = vpack.c.bf16 %v3043_v51, %v3035_v32  ;;  %3068 = vtanh.f32 %v2031_v47 }
 0x437   : > { %v3047_v58 = vpop.eup %3046  ;;  %v2146_v59 = vadd.f32 %v2145_v53, %v881_v31  ;;  %2278 = vmatprep.subr.bf16.mxu0 %v2251_v54  ;;  %v891_v61 = vpop.permute.xlu1 %890  ;;  %3070 = vtanh.f32 %v2144_v52 }
 0x438   : > { %v3049_v60 = vpop.eup %3048  ;;  %2319 = vmatprep.subr.bf16.mxu1 %v2253_v57  ;;  %2279 = vmatpush1.bf16.msra.mxu0 %v2250_v44  ;;  %v886_v0 = vpop.permute.xlu0 %885  ;;  %3072 = vtanh.f32 %v2033_v56 }
 0x439   : > { %v3051_v63 = vpop.eup %3050  ;;  %2320 = vmatpush1.bf16.msra.mxu1 %v2252_v50  ;;  %v2036_v1 = vpop.f32.mrb[84].mxu0  ;;  %3074 = vtanh.f32 %v2146_v59 }
 0x43a   : > { %v3053_v3 = vpop.eup %3052  ;;  %v2037_v4 = vadd.f32 %v2036_v1, %v886_v0  ;;  %v2149_v5 = vpop.f32.mrb[84].mxu1 }
 0x43b   : > { %v2038_v6 = vpop.f32.mrb[85].mxu0  ;;  %v3055_v7 = vpop.eup %3054  ;;  %v2150_v8 = vadd.f32 %v2149_v5, %v886_v0  ;;  %v2254_v2 = vpack.c.bf16 %v3053_v3, %v3045_v55 }
 0x43c   : > { %v2039_v13 = vadd.f32 %v2038_v6, %v886_v0  ;;  %v2151_v14 = vpop.f32.mrb[85].mxu1  ;;  %v2040_v15 = vpop.f32.mrb[86].mxu0  ;;  %3076 = vtanh.f32 %v2037_v4  ;;  %v2256_v21 = vpack.c.bf16 %v3055_v7, %v3047_v58 }
 0x43d   : > { %v3057_v16 = vpop.eup %3056  ;;  %v2152_v17 = vadd.f32 %v2151_v14, %v886_v0  ;;  %v2041_v18 = vadd.f32 %v2040_v15, %v891_v61  ;;  %v2153_v19 = vpop.f32.mrb[86].mxu1  ;;  %3078 = vtanh.f32 %v2150_v8 }
 0x43e   : > { %v2042_v20 = vpop.f32.mrb[87].mxu0  ;;  %v3059_v9 = vpop.eup %3058  ;;  %v2154_v22 = vadd.f32 %v2153_v19, %v891_v61  ;;  %v2255_v24 = vpack.c.bf16 %v3057_v16, %v3049_v60  ;;  %3080 = vtanh.f32 %v2039_v13 }
 0x43f   : > { %v2155_v23 = vpop.f32.mrb[87].mxu1  ;;  %v3061_v25 = vpop.eup %3060  ;;  %v2043_v26 = vadd.f32 %v2042_v20, %v891_v61  ;;  %v2257_v27 = vpack.c.bf16 %v3059_v9, %v3051_v63  ;;  %3082 = vtanh.f32 %v2152_v17 }
 0x440   : > { %v3063_v28 = vpop.eup %3062  ;;  %v2156_v10 = vadd.f32 %v2155_v23, %v891_v61  ;;  %2280 = vmatprep.subr.bf16.mxu0 %v2255_v24  ;;  %v901_v29 = vpop.permute.xlu1 %900  ;;  %3084 = vtanh.f32 %v2041_v18 }
 0x441   : > { %v3065_v11 = vpop.eup %3064  ;;  %2321 = vmatprep.subr.bf16.mxu1 %v2257_v27  ;;  %2281 = vmatpush1.bf16.msra.mxu0 %v2254_v2  ;;  %v896_v30 = vpop.permute.xlu0 %895  ;;  %3086 = vtanh.f32 %v2154_v22 }
 0x442   : > { %v3067_v12 = vpop.eup %3066  ;;  %2322 = vmatpush1.bf16.msra.mxu1 %v2256_v21  ;;  %v2046_v31 = vpop.f32.mrb[88].mxu0  ;;  %3088 = vtanh.f32 %v2043_v26 }
 0x443   : > { %v3069_v32 = vpop.eup %3068  ;;  %v2047_v33 = vadd.f32 %v2046_v31, %v896_v30  ;;  %v2159_v34 = vpop.f32.mrb[88].mxu1  ;;  %3090 = vtanh.f32 %v2156_v10 }
 0x444   : > { %v2048_v35 = vpop.f32.mrb[89].mxu0  ;;  %v3071_v36 = vpop.eup %3070  ;;  %v2160_v37 = vadd.f32 %v2159_v34, %v896_v30  ;;  %v2258_v41 = vpack.c.bf16 %v3069_v32, %v3061_v25 }
 0x445   : > { %v2049_v38 = vadd.f32 %v2048_v35, %v896_v30  ;;  %v2161_v39 = vpop.f32.mrb[89].mxu1  ;;  %v2050_v40 = vpop.f32.mrb[90].mxu0  ;;  %3092 = vtanh.f32 %v2047_v33  ;;  %v2260_v47 = vpack.c.bf16 %v3071_v36, %v3063_v28 }
 0x446   : > { %v3073_v42 = vpop.eup %3072  ;;  %v2162_v43 = vadd.f32 %v2161_v39, %v896_v30  ;;  %v2051_v44 = vadd.f32 %v2050_v40, %v901_v29  ;;  %v2163_v45 = vpop.f32.mrb[90].mxu1  ;;  %3094 = vtanh.f32 %v2160_v37 }
 0x447   : > { %v2052_v46 = vpop.f32.mrb[91].mxu0  ;;  %v3075_v48 = vpop.eup %3074  ;;  %v2164_v49 = vadd.f32 %v2163_v45, %v901_v29  ;;  %v2259_v51 = vpack.c.bf16 %v3073_v42, %v3065_v11  ;;  %3096 = vtanh.f32 %v2049_v38 }
 0x448   : > { %v2165_v50 = vpop.f32.mrb[91].mxu1  ;;  %v3077_v52 = vpop.eup %3076  ;;  %v2053_v53 = vadd.f32 %v2052_v46, %v901_v29  ;;  %v2261_v54 = vpack.c.bf16 %v3075_v48, %v3067_v12  ;;  %3098 = vtanh.f32 %v2162_v43  ;;  %v511_v46 = vld [vmem:[%s3852_s9] sm:$0xf] }
 0x449   : > { %v3079_v55 = vpop.eup %3078  ;;  %v2166_v56 = vadd.f32 %v2165_v50, %v901_v29  ;;  %2282 = vmatprep.subr.bf16.mxu0 %v2259_v51  ;;  %v911_v58 = vpop.permute.xlu1 %910  ;;  %3100 = vtanh.f32 %v2051_v44 }
 0x44a   : > { %v3081_v57 = vpop.eup %3080  ;;  %2323 = vmatprep.subr.bf16.mxu1 %v2261_v54  ;;  %2283 = vmatpush1.bf16.msra.mxu0 %v2258_v41  ;;  %v906_v60 = vpop.permute.xlu0 %905  ;;  %3102 = vtanh.f32 %v2164_v49 }
 0x44b   : > { %v3083_v59 = vpop.eup %3082  ;;  %2324 = vmatpush1.bf16.msra.mxu1 %v2260_v47  ;;  %v2056_v61 = vpop.f32.mrb[92].mxu0  ;;  %3104 = vtanh.f32 %v2053_v53 }
 0x44c   : > { %v3085_v63 = vpop.eup %3084  ;;  %v2057_v0 = vadd.f32 %v2056_v61, %v906_v60  ;;  %v2169_v1 = vpop.f32.mrb[92].mxu1  ;;  %3106 = vtanh.f32 %v2166_v56 }
 0x44d   : > { %v2058_v3 = vpop.f32.mrb[93].mxu0  ;;  %v3087_v4 = vpop.eup %3086  ;;  %v2170_v5 = vadd.f32 %v2169_v1, %v906_v60  ;;  %v2262_v13 = vpack.c.bf16 %v3085_v63, %v3077_v52 }
 0x44e   : > { %v2059_v6 = vadd.f32 %v2058_v3, %v906_v60  ;;  %v2171_v7 = vpop.f32.mrb[93].mxu1  ;;  %v2060_v8 = vpop.f32.mrb[94].mxu0  ;;  %3108 = vtanh.f32 %v2057_v0  ;;  %v2264_v18 = vpack.c.bf16 %v3087_v4, %v3079_v55 }
 0x44f   : > { %v3089_v14 = vpop.eup %3088  ;;  %v2172_v15 = vadd.f32 %v2171_v7, %v906_v60  ;;  %v2061_v2 = vadd.f32 %v2060_v8, %v911_v58  ;;  %v2173_v16 = vpop.f32.mrb[94].mxu1  ;;  %3110 = vtanh.f32 %v2170_v5 }
 0x450   : > { %v2062_v17 = vpop.f32.mrb[95].mxu0  ;;  %v3091_v19 = vpop.eup %3090  ;;  %v2174_v20 = vadd.f32 %v2173_v16, %v911_v58  ;;  %v2263_v9 = vpack.c.bf16 %v3089_v14, %v3081_v57  ;;  %3112 = vtanh.f32 %v2059_v6 }
 0x451   : > { %v2175_v21 = vpop.f32.mrb[95].mxu1  ;;  %v3093_v22 = vpop.eup %3092  ;;  %v2063_v23 = vadd.f32 %v2062_v17, %v911_v58  ;;  %v2265_v24 = vpack.c.bf16 %v3091_v19, %v3083_v59  ;;  %3114 = vtanh.f32 %v2172_v15  ;;  %v3205_v17 = vmov 1983009808  }
 0x452   : > { %v3095_v25 = vpop.eup %3094  ;;  %v2176_v26 = vadd.f32 %v2175_v21, %v911_v58  ;;  %2284 = vmatprep.subr.bf16.mxu0 %v2263_v9  ;;  %3116 = vtanh.f32 %v2061_v2  ;;  %v916_v47 = vpop.permute.xlu0 %915 }
 0x453   : > { %v3097_v27 = vpop.eup %3096  ;;  %2325 = vmatprep.subr.bf16.mxu1 %v2265_v24  ;;  %2285 = vmatpush1.bf16.msra.mxu0 %v2262_v13  ;;  %3118 = vtanh.f32 %v2174_v20 }
 0x454   : > { %v3099_v28 = vpop.eup %3098  ;;  %2326 = vmatpush1.bf16.msra.mxu1 %v2264_v18  ;;  %3120 = vtanh.f32 %v2063_v23  ;;  %v2419_v18 = vunpack.c.l.s4 %v3205_v17 }
 0x455   : > { %v3101_v10 = vpop.eup %3100  ;;  %3122 = vtanh.f32 %v2176_v26 }
 0x456   : > { %v3103_v11 = vpop.eup %3102  ;;  %v2266_v29 = vpack.c.bf16 %v3101_v10, %v3093_v22  ;;  %v2420_v9 = vunpack.c.0.s8 %v2419_v18 }
 0x457   : > { %v3105_v12 = vpop.eup %3104  ;;  %v2268_v30 = vpack.c.bf16 %v3103_v11, %v3095_v25 }
 0x458   : > { %v3107_v31 = vpop.eup %3106  ;;  %v2267_v32 = vpack.c.bf16 %v3105_v12, %v3097_v27  ;;  %v2423_v11 = vsub.s32 %v2420_v9, %v3501_v62 }
 0x459   : > { %v3109_v33 = vpop.eup %3108  ;;  %v2269_v34 = vpack.c.bf16 %v3107_v31, %v3099_v28 }
 0x45a   : > { %v3111_v35 = vpop.eup %3110  ;;  %2286 = vmatprep.subr.bf16.mxu0 %v2267_v32 }
 0x45b   : > { %v3113_v36 = vpop.eup %3112  ;;  %2327 = vmatprep.subr.bf16.mxu1 %v2269_v34  ;;  %2287 = vmatpush1.bf16.msra.mxu0 %v2266_v29 }
 0x45c   : > { %v3115_v37 = vpop.eup %3114  ;;  %2328 = vmatpush1.bf16.msra.mxu1 %v2268_v30 }
 0x45d   : > { %v3117_v38 = vpop.eup %3116 }
 0x45e   : > { %v3119_v39 = vpop.eup %3118  ;;  %v2270_v40 = vpack.c.bf16 %v3117_v38, %v3109_v33 }
 0x45f   : > { %v3121_v41 = vpop.eup %3120  ;;  %v2272_v42 = vpack.c.bf16 %v3119_v39, %v3111_v35 }
 0x460   : > { %v3123_v43 = vpop.eup %3122  ;;  %v2271_v44 = vpack.c.bf16 %v3121_v41, %v3113_v36 }
 0x461   : > { %v2273_v45 = vpack.c.bf16 %v3123_v43, %v3115_v37 }
 0x462   : > { %2288 = vmatprep.subr.bf16.mxu0 %v2271_v44 }
 0x463   : > { %2329 = vmatprep.subr.bf16.mxu1 %v2273_v45  ;;  %2289 = vmatpush1.bf16.msra.mxu0 %v2270_v40 }
 0x464   : > { %2330 = vmatpush1.bf16.msra.mxu1 %v2272_v42 }
 0x466   : > { %2307 = vmatmul.mubr.bf16.vlgmr.msra.gmra.mrb[96].mxu0 %v511_v46 }
 0x467   : > { %2348 = vmatmul.mubr.bf16.vlgmr.msra.gmra.mrb[96].mxu1 %v511_v46 }
 0x539   : > { %v2308_v48 = vpop.f32.mrb[96].mxu0 }
 0x53a   : > { %v3771_v49 = vadd.f32 %v2308_v48, %v916_v47  ;;  %v2349_v50 = vpop.f32.mrb[96].mxu1  ;;  %v2310_v51 = vpop.f32.mrb[97].mxu0 }
 0x53b   : > { %v3773_v52 = vadd.f32 %v2349_v50, %v916_v47  ;;  %v3775_v53 = vadd.f32 %v2310_v51, %v916_v47  ;;  %v2351_v54 = vpop.f32.mrb[97].mxu1  ;;  %v2312_v55 = vpop.f32.mrb[98].mxu0 }
 0x53c   : > { %v2360_v56 = vmin.f32 %v3771_v49, 20.0  ;;  %v3778_v57 = vadd.f32 %v2351_v54, %v916_v47  ;;  %v2353_v58 = vpop.f32.mrb[98].mxu1  ;;  %v2313_v59 = vpop.f32.mrb[99].mxu0  ;;  %vm2356_vm0 = vcmp.gt.f32.partialorder %v3771_v49, 20.0 }
 0x53d   : > { %v2362_v60 = vmin.f32 %v3773_v52, 20.0  ;;  %v2361_v61 = vmin.f32 %v3775_v53, 20.0  ;;  %v2354_v63 = vpop.f32.mrb[99].mxu1  ;;  %vm2358_vm3 = vcmp.gt.f32.partialorder %v3773_v52, 20.0  ;;  %vm2357_vm5 = vcmp.gt.f32.partialorder %v3775_v53, 20.0 }
 0x53e   : > { %v2364_v0 = vmul.f32 1.442695, %v2360_v56  ;;  %v2363_v1 = vmin.f32 %v3778_v57, 20.0  ;;  %vm2359_vm7 = vcmp.gt.f32.partialorder %v3778_v57, 20.0 }
 0x53f   : > { %v2368_v3 = vmul.f32 1.442695, %v2362_v60  ;;  %v2366_v4 = vmul.f32 1.442695, %v2361_v61 }
 0x540   : > { %3124 = vpow2.f32 %v2364_v0  ;;  %v2370_v5 = vmul.f32 1.442695, %v2363_v1 }
 0x541   : > { %3126 = vpow2.f32 %v2368_v3 }
 0x542   : > { %3128 = vpow2.f32 %v2366_v4 }
 0x543   : > { %3130 = vpow2.f32 %v2370_v5 }
 0x54a   : > { %v3125_v6 = vpop.eup %3124 }
 0x54b   : > { %v3127_v7 = vpop.eup %3126  ;;  %v2372_v8 = vadd.f32 1.0, %v3125_v6  ;;  %v2375_v19 = vmul.f32 -0.5, %v3125_v6  ;;  %v2378_v24 = vand.u32 2147483647, %v3125_v6 }
 0x54c   : > { %v3129_v13 = vpop.eup %3128  ;;  %v2390_v14 = vadd.f32 1.0, %v3127_v7  ;;  %v2393_v20 = vmul.f32 -0.5, %v3127_v7  ;;  %v2396_v26 = vand.u32 2147483647, %v3127_v7 }
 0x54d   : > { %v3131_v15 = vpop.eup %3130  ;;  %3132 = vlog2.f32 %v2372_v8  ;;  %v2381_v2 = vadd.f32 1.0, %v3129_v13  ;;  %v2384_v21 = vmul.f32 -0.5, %v3129_v13  ;;  %v2376_v22 = vadd.f32 1.0, %v2375_v19 }
 0x54e   : > { %3134 = vlog2.f32 %v2390_v14  ;;  %v2399_v16 = vadd.f32 1.0, %v3131_v15  ;;  %v2402_v23 = vmul.f32 -0.5, %v3131_v15  ;;  %v2394_v25 = vadd.f32 1.0, %v2393_v20 }
 0x54f   : > { %3136 = vlog2.f32 %v2381_v2  ;;  %v2385_v27 = vadd.f32 1.0, %v2384_v21  ;;  %v2387_v10 = vand.u32 2147483647, %v3129_v13  ;;  %v2377_v30 = vmul.f32 %v3125_v6, %v2376_v22 }
 0x550   : > { %3138 = vlog2.f32 %v2399_v16  ;;  %v2403_v31 = vadd.f32 1.0, %v2402_v23  ;;  %vm2379_vm1 = vcmp.lt.f32.partialorder %v2378_v24, 0.0004427343  ;;  %v2395_v34 = vmul.f32 %v3127_v7, %v2394_v25 }
 0x551   : > { %v2405_v35 = vand.u32 2147483647, %v3131_v15  ;;  %vm2397_vm2 = vcmp.lt.f32.partialorder %v2396_v26, 0.0004427343  ;;  %v2386_v38 = vmul.f32 %v3129_v13, %v2385_v27  ;;  %vm2388_vm4 = vcmp.lt.f32.partialorder %v2387_v10, 0.0004427343 }
 0x552   : > { %v2404_v43 = vmul.f32 %v3131_v15, %v2403_v31 }
 0x553   : > { %vm2406_vm6 = vcmp.lt.f32.partialorder %v2405_v35, 0.0004427343 }
 0x557   : > { %v3133_v28 = vpop.eup %3132 }
 0x558   : > { %v3135_v29 = vpop.eup %3134  ;;  %v2374_v12 = vmul.f32 0.6931472, %v3133_v28 }
 0x559   : > { %v3137_v32 = vpop.eup %3136  ;;  %v2392_v33 = vmul.f32 0.6931472, %v3135_v29 }
 0x55a   : > { %v2380_v36 = vsel %vm2379_vm1, %v2377_v30, %v2374_v12  ;;  %v2383_v37 = vmul.f32 0.6931472, %v3137_v32  ;;  %v3139_v39 = vpop.eup %3138 }
 0x55b   : > { %v2408_v62 = vsel %vm2356_vm0, %v3771_v49, %v2380_v36  ;;  %v2398_v40 = vsel %vm2397_vm2, %v2395_v34, %v2392_v33  ;;  %v2401_v42 = vmul.f32 0.6931472, %v3139_v39 }
 0x55c   : > { %v2389_v41 = vsel %vm2388_vm4, %v2386_v38, %v2383_v37  ;;  %v2410_v44 = vsel %vm2358_vm3, %v3773_v52, %v2398_v40 }
 0x55d   : > { %v2409_v45 = vsel %vm2357_vm5, %v3775_v53, %v2389_v41  ;;  %v2407_v47 = vsel %vm2406_vm6, %v2404_v43, %v2401_v42 }
 0x55e   : > { %v2416_v46 = vcombine.low %v2408_v62, %v2409_v45  ;;  %v2411_v48 = vsel %vm2359_vm7, %v3778_v57, %v2407_v47 }
 0x55f   : > { %v2417_v49 = vcombine.low %v2410_v44, %v2411_v48 }
 0x560   : > { %v2424_v50 = vrot.slane %v2416_v46, %v2423_v11 }
 0x561   : > { %v2431_v51 = vrot.slane %v2417_v49, %v2423_v11 }
 0x563   : > { %v2432_v54 = vcombine.low %v2424_v50, %v2431_v51 }
 0x565   : > { %2434 = vst [vmem:[%s377_s12] sm:$0xff] %v2432_v54 }
 0x566   : > { %3153 = shalt.err (!%p3150_p3)
}
 0x567   : > { %s3154_s16 = scalar_lea.hbm %s3799_s14, 128  ;;  %s3158_s30 = scalar_lea.hbm %s3854_s11, 256 }
 0x568   : > { %p3155_p4 = scmp.ne.s32.totalorder %s3799_s14, %s3154_s16  ;;  %p3159_p9 = scmp.lt.u32.totalorder %s3799_s14, %s3854_s11 }
 0x569   : > { %p3160_p10 = scmp.lt.u32.totalorder %s3158_s30, %s3154_s16  ;;  %p3162_p12 = scmp.lt.u32.totalorder %s3154_s16, %s3799_s14 }
 0x56a   : > { %p3156_p7 = pnand %p3155_p4, %p3305_p5 }
 0x56b   : > { %p3161_p11 = por %p3160_p10, %p3159_p9 }
 0x56c   : > { %p3157_p8 = pneg %p3156_p7 }
 0x56d   : > { %p3163_p13 = por %p3162_p12, %p3161_p11 }
 0x56f   : > { %p3164_p0 = pnand %p3163_p13, %p3157_p8 }
 0x571   : > { %3167 = shalt.err (!%p3164_p0)
}
 0x572   : > { %2545 = dma.vmem_to_hbm [thread:$0]  (%p3305_p5), %s3801_s1, 128, %s3799_s14, %s2436_s15  }
 0x573 PF: > { %p2551_p1 = scmp.ge.s32.totalorder %s3202_s20, 2  ;;  %s2462_s22 = sand.u32 1, %s3190_s17  }
 0x574   : > { %s2463_s24 = scalar_lea.sflag [#allocation3], %s2462_s22 }
 0x575   : > { %p2548_p2 = pnand %p2551_p1, %p3309_p6 }
 0x577   : > { %3185 = dma.done.wait (!%p2548_p2), %s2463_s24, 128  }
 0x578   : > { %3187 = vsyncadd (!%p2548_p2), %s2463_s24, 4294967168  ;;  %p21_p3 = scmp.ge.s32.totalorder %s3292_s23, 4   ;;  %s3859_s17 = smov %s3194_s18 }
 0x579   : > { %s3860_s18 = smov %s3198_s19  ;;  %s3861_s19 = smov %s3303_s26 }
 0x57a   : > { %s3862_s20 = smov %s3292_s23  ;;  %23 = sbr.rel (!%p21_p3) target bundleno = 5 (0x5), region = 99 }
 0x581   :  { %2468 = vsyncpa [#allocation3], 1 }
 0x582   :  { %2470 = vsyncpa [#allocation3 + $0x1], 1 }

</bundles_post_ra>
